<compile_context>
chip_gen: v7x
topology: tpu7x:2x2x1
jax: 0.10.0
libtpu: 0.0.40
codegen_flags: <defaults>
</compile_context>

<pallas_src>
import functools

import jax
import jax.numpy as jnp
from jax import lax
from jax.experimental import pallas as pl
from jax.experimental.pallas import tpu as pltpu

# ---- tiny synthetic BERT config ------------------------------------------------
B, S, H = 2, 8, 32          # batch, seq-len, hidden
BS = B * S
NH, DH = 2, 16              # heads, head dim (NH * DH == H)
FF = 128                    # FFN intermediate size
LAYERS = 2                  # encoder layers
VOCAB = 50
NUM_CLS, NUM_NER = 3, 4     # classifier / NER head sizes
NPAD = 128                  # lane-dense padded head / QKV width
MAT_ROWS = 3 * H + FF       # wqkv(H) + wo(H) + w1(H) + w2(FF) rows = 224
N_VEC = 2 + 8 * LAYERS      # emb LN (2) + 8 small vectors per layer
LN_EPS = 1e-12


# ---------------------------------------------------------------------------------
# Single fused kernel: embeddings-LN + all encoder layers + task head, whole batch.
# ---------------------------------------------------------------------------------
def _fused_forward_kernel(emb_ref, mask_ref, vecs_ref, mats_ref,
                          head_w_ref, head_b_ref, out_ref):
    f32 = jnp.float32
    bf16 = jnp.bfloat16

    def layernorm(x, g_row, b_row):
        g = vecs_ref[g_row:g_row + 1, :H]
        b = vecs_ref[b_row:b_row + 1, :H]
        mu = jnp.mean(x, axis=-1, keepdims=True)
        xc = x - mu
        var = jnp.mean(xc * xc, axis=-1, keepdims=True)
        return xc * lax.rsqrt(var + LN_EPS) * g + b

    mask = mask_ref[...]                               # [B, 1, S] additive bias
    scale = f32(1.0 / (DH ** 0.5))

    x = emb_ref[...].astype(f32)                       # [BS, H]
    x = layernorm(x, 0, 1)                             # embedding LayerNorm

    for l in range(LAYERS):                            # static unroll (LAYERS=2)
        vb = 2 + 8 * l

        # ---- fused QKV projection: one MXU pass, 128-lane-padded result ----
        qkv = jnp.dot(x.astype(bf16), mats_ref[l, 0:H, :],
                      preferred_element_type=f32) + vecs_ref[vb:vb + 1, :]   # [BS, 128]

        # ---- attention: batched over B via dot_general, static loop over heads ----
        attn = jnp.zeros((BS, H), f32)
        for h in range(NH):                            # static unroll (NH=2)
            q = qkv[:, h * DH:(h + 1) * DH].reshape(B, S, DH).astype(bf16)
            k = qkv[:, H + h * DH:H + (h + 1) * DH].reshape(B, S, DH).astype(bf16)
            v = qkv[:, 2 * H + h * DH:2 * H + (h + 1) * DH].reshape(B, S, DH).astype(bf16)
            # scores: contraction on head dim, B as batch dim (no k.T transpose)
            s = lax.dot_general(q, k, (((2,), (2,)), ((0,), (0,))),
                                preferred_element_type=f32) * scale + mask   # [B, S, S]
            s = s - jnp.max(s, axis=-1, keepdims=True)
            p = jnp.exp(s)
            p = p * pl.reciprocal(jnp.sum(p, axis=-1, keepdims=True), approx=True)
            ctx = lax.dot_general(p.astype(bf16), v, (((2,), (1,)), ((0,), (0,))),
                                  preferred_element_type=f32)                # [B, S, DH]
            # per-head output projection partial sum merges heads (no lane concat)
            attn = attn + jnp.dot(ctx.reshape(BS, DH).astype(bf16),
                                  mats_ref[l, H + h * DH:H + (h + 1) * DH, :H],
                                  preferred_element_type=f32)
        attn = attn + vecs_ref[vb + 1:vb + 2, :H]
        x = layernorm(x + attn, vb + 2, vb + 3)

        # ---- feed-forward ----
        ff = jnp.dot(x.astype(bf16), mats_ref[l, 2 * H:3 * H, :FF],
                     preferred_element_type=f32) + vecs_ref[vb + 4:vb + 5, :FF]
        # TODO(synk): HF BERT default is exact erf GELU; tanh approximation used here.
        c = f32(0.7978845608028654)                    # sqrt(2/pi)
        ff = 0.5 * ff * (1.0 + jnp.tanh(c * (ff + 0.044715 * ff * ff * ff)))
        ff = jnp.dot(ff.astype(bf16), mats_ref[l, 3 * H:3 * H + FF, :H],
                     preferred_element_type=f32) + vecs_ref[vb + 5:vb + 6, :H]
        x = layernorm(x + ff, vb + 6, vb + 7)

    # ---- task head (128 padded output lanes -> lane-dense, unmasked store) ----
    logits = jnp.dot(x.astype(bf16), head_w_ref[...],
                     preferred_element_type=f32) + head_b_ref[...]
    out_ref[...] = logits                              # [BS, NPAD] f32


def fused_forward(emb2, mask3, vecs, mats, head_w, head_b):
    """emb2: [B*S, H]; mask3: [B, 1, S] additive. Returns padded logits [B*S, NPAD]."""
    vmem_spec = pl.BlockSpec(memory_space=pltpu.MemorySpace.VMEM)
    return pl.pallas_call(
        _fused_forward_kernel,
        out_shape=jax.ShapeDtypeStruct((BS, NPAD), jnp.float32),
        in_specs=[vmem_spec] * 6,
        out_specs=vmem_spec,
    )(emb2, mask3, vecs, mats, head_w, head_b)


# ---------------------------------------------------------------------------------
# Parameter construction (deterministic, synthetic), packed for the kernel.
# ---------------------------------------------------------------------------------
def make_params(key):
    def nrm(k, shape):
        return 0.02 * jax.random.normal(k, shape, jnp.float32)

    keys = jax.random.split(key, 8 + LAYERS)

    # big matrices: one bf16 slab per layer  [LAYERS, 224, 128]
    mats = jnp.zeros((LAYERS, MAT_ROWS, NPAD), jnp.float32)
    for l in range(LAYERS):
        lk = jax.random.split(keys[8 + l], 6)
        wq, wk, wv = nrm(lk[0], (H, H)), nrm(lk[1], (H, H)), nrm(lk[2], (H, H))
        wqkv = jnp.concatenate([wq, wk, wv], axis=1)                 # [H, 3H]
        wo = nrm(lk[3], (H, H))
        w1 = nrm(lk[4], (H, FF))
        w2 = nrm(lk[5], (FF, H))
        mats = mats.at[l, 0:H, 0:3 * H].set(wqkv)
        mats = mats.at[l, H:2 * H, 0:H].set(wo)
        mats = mats.at[l, 2 * H:3 * H, 0:FF].set(w1)
        mats = mats.at[l, 3 * H:3 * H + FF, 0:H].set(w2)
    mats = mats.astype(jnp.bfloat16)

    # small vectors: one f32 table [N_VEC, 128]
    # row 0: emb LN gamma, row 1: emb LN beta; per layer (base=2+8l):
    #   +0 bqkv, +1 bo, +2 ln1g, +3 ln1b, +4 b1, +5 b2, +6 ln2g, +7 ln2b
    vecs = jnp.zeros((N_VEC, NPAD), jnp.float32)
    vecs = vecs.at[0, :H].set(1.0)                                   # emb gamma
    for l in range(LAYERS):
        base = 2 + 8 * l
        vecs = vecs.at[base + 2, :H].set(1.0)                        # ln1 gamma
        vecs = vecs.at[base + 6, :H].set(1.0)                        # ln2 gamma

    # task heads, zero-padded to 128 output lanes
    cls_w = nrm(keys[3], (H, NUM_CLS))
    ner_w = nrm(keys[4], (H, NUM_NER))
    cls_w_pad = jnp.zeros((H, NPAD), jnp.float32).at[:, :NUM_CLS].set(cls_w).astype(jnp.bfloat16)
    ner_w_pad = jnp.zeros((H, NPAD), jnp.float32).at[:, :NUM_NER].set(ner_w).astype(jnp.bfloat16)
    cls_b_pad = jnp.zeros((1, NPAD), jnp.float32)
    ner_b_pad = jnp.zeros((1, NPAD), jnp.float32)

    return {
        "word_emb": nrm(keys[0], (VOCAB, H)),
        "pos_emb": nrm(keys[1], (S, H)),
        "type_emb": nrm(keys[2], (2, H)),
        "vecs": vecs,
        "mats": mats,
        "cls_w_pad": cls_w_pad, "cls_b_pad": cls_b_pad,
        "ner_w_pad": ner_w_pad, "ner_b_pad": ner_b_pad,
    }


# ---------------------------------------------------------------------------------
# Forward pass (mirrors MultiTaskModel.forward); fully jitted, task is static.
# ---------------------------------------------------------------------------------
@functools.partial(jax.jit, static_argnames=("task",))
def multitask_forward(params, input_ids, attention_mask, task):
    # embeddings (gather = plain-JAX glue); token_type_ids assumed all-zero
    emb = (params["word_emb"][input_ids]
           + params["pos_emb"][None, :, :]
           + params["type_emb"][0][None, None, :])                     # [B, S, H]
    emb2 = emb.reshape(BS, H)
    mask3 = ((1.0 - attention_mask.astype(jnp.float32)) * -10000.0
             ).reshape(B, 1, S)                                         # additive bias

    if task == "A":
        head_w, head_b = params["cls_w_pad"], params["cls_b_pad"]
    else:
        head_w, head_b = params["ner_w_pad"], params["ner_b_pad"]

    logits_pad = fused_forward(emb2, mask3, params["vecs"], params["mats"],
                               head_w, head_b)                          # [B*S, NPAD]
    logits_pad = logits_pad.reshape(B, S, NPAD)

    if task == "A":
        return logits_pad[:, 0, :NUM_CLS]        # classifier on the [CLS] token
    else:
        return logits_pad[:, :, :NUM_NER]        # NER head on all tokens


# ---------------------------------------------------------------------------------
if __name__ == "__main__":
    key = jax.random.PRNGKey(0)
    k_param, k_ids = jax.random.split(key)
    params = make_params(k_param)

    input_ids = jax.random.randint(k_ids, (B, S), 0, VOCAB, dtype=jnp.int32)
    attention_mask = jnp.ones((B, S), dtype=jnp.int32)

    logits_a = multitask_forward(params, input_ids, attention_mask, task="A")
    logits_b = multitask_forward(params, input_ids, attention_mask, task="B")
    jax.block_until_ready((logits_a, logits_b))

    assert logits_a.shape == (B, NUM_CLS)
    assert logits_b.shape == (B, S, NUM_NER)
    assert bool(jnp.all(jnp.isfinite(logits_a))) and bool(jnp.all(jnp.isfinite(logits_b)))
    print("KERNEL_OK")
</pallas_src>

<mosaic_0001>
module attributes {stable_mosaic.version = 11 : i64} {
  func.func @_fused_forward_kernel(%arg0: memref<16x32xf32, #tpu.memory_space<vmem>>, %arg1: memref<2x1x8xf32, #tpu.memory_space<vmem>>, %arg2: memref<18x128xf32, #tpu.memory_space<vmem>>, %arg3: memref<2x224x128xbf16, #tpu.memory_space<vmem>>, %arg4: memref<32x128xbf16, #tpu.memory_space<vmem>>, %arg5: memref<1x128xf32, #tpu.memory_space<vmem>>, %arg6: memref<16x128xf32, #tpu.memory_space<vmem>>) attributes {dimension_semantics = [], scalar_prefetch = 0 : i64, scratch_operands = 0 : i64, tpu.core_type = #tpu.core_type<tc>} {
    %c0 = arith.constant 0 : index
    %c0_0 = arith.constant 0 : index
    %c0_1 = arith.constant 0 : index
    %0 = vector.load %arg1[%c0, %c0_0, %c0_1] : memref<2x1x8xf32, #tpu.memory_space<vmem>>, vector<2x1x8xf32>
    %c0_2 = arith.constant 0 : index
    %c0_3 = arith.constant 0 : index
    %1 = vector.load %arg0[%c0_2, %c0_3] : memref<16x32xf32, #tpu.memory_space<vmem>>, vector<16x32xf32>
    %c0_4 = arith.constant 0 : index
    %c0_5 = arith.constant 0 : index
    %2 = vector.load %arg2[%c0_4, %c0_5] : memref<18x128xf32, #tpu.memory_space<vmem>>, vector<1x32xf32>
    %c1 = arith.constant 1 : index
    %c0_6 = arith.constant 0 : index
    %3 = vector.load %arg2[%c1, %c0_6] : memref<18x128xf32, #tpu.memory_space<vmem>>, vector<1x32xf32>
    %cst = arith.constant dense<0.000000e+00> : vector<16xf32>
    %4 = vector.multi_reduction <add>, %1, %cst [1] : vector<16x32xf32> to vector<16xf32>
    %5 = vector.shape_cast %4 : vector<16xf32> to vector<16x1xf32>
    %cst_7 = arith.constant 3.200000e+01 : f32
    %6 = vector.broadcast %cst_7 : f32 to vector<16x1xf32>
    %7 = arith.divf %5, %6 : vector<16x1xf32>
    %8 = vector.broadcast %7 : vector<16x1xf32> to vector<16x32xf32>
    %9 = arith.subf %1, %8 : vector<16x32xf32>
    %10 = arith.mulf %9, %9 : vector<16x32xf32>
    %cst_8 = arith.constant dense<0.000000e+00> : vector<16xf32>
    %11 = vector.multi_reduction <add>, %10, %cst_8 [1] : vector<16x32xf32> to vector<16xf32>
    %12 = vector.shape_cast %11 : vector<16xf32> to vector<16x1xf32>
    %cst_9 = arith.constant 3.200000e+01 : f32
    %13 = vector.broadcast %cst_9 : f32 to vector<16x1xf32>
    %14 = arith.divf %12, %13 : vector<16x1xf32>
    %cst_10 = arith.constant 9.99999996E-13 : f32
    %15 = vector.broadcast %cst_10 : f32 to vector<16x1xf32>
    %16 = arith.addf %14, %15 : vector<16x1xf32>
    %17 = math.rsqrt %16 : vector<16x1xf32>
    %18 = vector.broadcast %17 : vector<16x1xf32> to vector<16x32xf32>
    %19 = arith.mulf %9, %18 : vector<16x32xf32>
    %20 = vector.broadcast %2 : vector<1x32xf32> to vector<16x32xf32>
    %21 = arith.mulf %19, %20 : vector<16x32xf32>
    %22 = vector.broadcast %3 : vector<1x32xf32> to vector<16x32xf32>
    %23 = arith.addf %21, %22 : vector<16x32xf32>
    %24 = arith.truncf %23 : vector<16x32xf32> to vector<16x32xbf16>
    %c0_11 = arith.constant 0 : index
    %c0_12 = arith.constant 0 : index
    %c0_13 = arith.constant 0 : index
    %25 = vector.load %arg3[%c0_11, %c0_12, %c0_13] : memref<2x224x128xbf16, #tpu.memory_space<vmem>>, vector<1x32x128xbf16>
    %26 = vector.shape_cast %25 : vector<1x32x128xbf16> to vector<32x128xbf16>
    %cst_14 = arith.constant dense<0.000000e+00> : vector<16x128xf32>
    %27 = tpu.matmul %24, %26, %cst_14 {dimension_numbers = #tpu.dot_dimension_numbers<[1], [0], [0], [1], [0, 0, 1, 1], [], []>} : vector<16x32xbf16>, vector<32x128xbf16>, vector<16x128xf32> -> vector<16x128xf32>
    %c2 = arith.constant 2 : index
    %c0_15 = arith.constant 0 : index
    %28 = vector.load %arg2[%c2, %c0_15] : memref<18x128xf32, #tpu.memory_space<vmem>>, vector<1x128xf32>
    %29 = vector.broadcast %28 : vector<1x128xf32> to vector<16x128xf32>
    %30 = arith.addf %27, %29 : vector<16x128xf32>
    %cst_16 = arith.constant 0.000000e+00 : f32
    %31 = vector.broadcast %cst_16 : f32 to vector<16x32xf32>
    %32 = vector.extract_strided_slice %30 {offsets = [0, 0], sizes = [16, 16], strides = [1, 1]} : vector<16x128xf32> to vector<16x16xf32>
    %33 = vector.shape_cast %32 : vector<16x16xf32> to vector<2x8x16xf32>
    %34 = arith.truncf %33 : vector<2x8x16xf32> to vector<2x8x16xbf16>
    %35 = vector.extract_strided_slice %30 {offsets = [0, 32], sizes = [16, 16], strides = [1, 1]} : vector<16x128xf32> to vector<16x16xf32>
    %36 = vector.shape_cast %35 : vector<16x16xf32> to vector<2x8x16xf32>
    %37 = arith.truncf %36 : vector<2x8x16xf32> to vector<2x8x16xbf16>
    %38 = vector.extract_strided_slice %30 {offsets = [0, 64], sizes = [16, 16], strides = [1, 1]} : vector<16x128xf32> to vector<16x16xf32>
    %39 = vector.shape_cast %38 : vector<16x16xf32> to vector<2x8x16xf32>
    %40 = arith.truncf %39 : vector<2x8x16xf32> to vector<2x8x16xbf16>
    %cst_17 = arith.constant dense<0.000000e+00> : vector<2x8x8xf32>
    %41 = tpu.matmul %34, %37, %cst_17 {dimension_numbers = #tpu.dot_dimension_numbers<[2], [2], [1], [1], [0, 0, 0, 1, 1, 1], [0], [0]>} : vector<2x8x16xbf16>, vector<2x8x16xbf16>, vector<2x8x8xf32> -> vector<2x8x8xf32>
    %cst_18 = arith.constant 2.500000e-01 : f32
    %42 = vector.broadcast %cst_18 : f32 to vector<2x8x8xf32>
    %43 = arith.mulf %41, %42 : vector<2x8x8xf32>
    %44 = vector.broadcast %0 : vector<2x1x8xf32> to vector<2x8x8xf32>
    %45 = arith.addf %43, %44 : vector<2x8x8xf32>
    %cst_19 = arith.constant dense<0xFF800000> : vector<2x8xf32>
    %46 = vector.multi_reduction <maximumf>, %45, %cst_19 [2] : vector<2x8x8xf32> to vector<2x8xf32>
    %47 = vector.shape_cast %46 : vector<2x8xf32> to vector<2x8x1xf32>
    %48 = vector.broadcast %47 : vector<2x8x1xf32> to vector<2x8x8xf32>
    %49 = arith.subf %45, %48 : vector<2x8x8xf32>
    %50 = math.exp %49 : vector<2x8x8xf32>
    %cst_20 = arith.constant dense<0.000000e+00> : vector<2x8xf32>
    %51 = vector.multi_reduction <add>, %50, %cst_20 [2] : vector<2x8x8xf32> to vector<2x8xf32>
    %52 = vector.shape_cast %51 : vector<2x8xf32> to vector<2x8x1xf32>
    %53 = tpu.reciprocal %52 {approx = true} : vector<2x8x1xf32> -> vector<2x8x1xf32>
    %54 = vector.broadcast %53 : vector<2x8x1xf32> to vector<2x8x8xf32>
    %55 = arith.mulf %50, %54 : vector<2x8x8xf32>
    %56 = arith.truncf %55 : vector<2x8x8xf32> to vector<2x8x8xbf16>
    %cst_21 = arith.constant dense<0.000000e+00> : vector<2x8x16xf32>
    %57 = tpu.matmul %56, %40, %cst_21 {dimension_numbers = #tpu.dot_dimension_numbers<[2], [1], [1], [2], [0, 0, 0, 1, 1, 2], [0], [0]>} : vector<2x8x8xbf16>, vector<2x8x16xbf16>, vector<2x8x16xf32> -> vector<2x8x16xf32>
    %58 = vector.shape_cast %57 : vector<2x8x16xf32> to vector<16x16xf32>
    %59 = arith.truncf %58 : vector<16x16xf32> to vector<16x16xbf16>
    %c0_22 = arith.constant 0 : index
    %c32 = arith.constant 32 : index
    %c0_23 = arith.constant 0 : index
    %60 = vector.load %arg3[%c0_22, %c32, %c0_23] : memref<2x224x128xbf16, #tpu.memory_space<vmem>>, vector<1x16x32xbf16>
    %61 = vector.shape_cast %60 : vector<1x16x32xbf16> to vector<16x32xbf16>
    %cst_24 = arith.constant dense<0.000000e+00> : vector<16x32xf32>
    %62 = tpu.matmul %59, %61, %cst_24 {dimension_numbers = #tpu.dot_dimension_numbers<[1], [0], [0], [1], [0, 0, 1, 1], [], []>} : vector<16x16xbf16>, vector<16x32xbf16>, vector<16x32xf32> -> vector<16x32xf32>
    %63 = arith.addf %31, %62 : vector<16x32xf32>
    %64 = vector.extract_strided_slice %30 {offsets = [0, 16], sizes = [16, 16], strides = [1, 1]} : vector<16x128xf32> to vector<16x16xf32>
    %65 = vector.shape_cast %64 : vector<16x16xf32> to vector<2x8x16xf32>
    %66 = arith.truncf %65 : vector<2x8x16xf32> to vector<2x8x16xbf16>
    %67 = vector.extract_strided_slice %30 {offsets = [0, 48], sizes = [16, 16], strides = [1, 1]} : vector<16x128xf32> to vector<16x16xf32>
    %68 = vector.shape_cast %67 : vector<16x16xf32> to vector<2x8x16xf32>
    %69 = arith.truncf %68 : vector<2x8x16xf32> to vector<2x8x16xbf16>
    %70 = vector.extract_strided_slice %30 {offsets = [0, 80], sizes = [16, 16], strides = [1, 1]} : vector<16x128xf32> to vector<16x16xf32>
    %71 = vector.shape_cast %70 : vector<16x16xf32> to vector<2x8x16xf32>
    %72 = arith.truncf %71 : vector<2x8x16xf32> to vector<2x8x16xbf16>
    %cst_25 = arith.constant dense<0.000000e+00> : vector<2x8x8xf32>
    %73 = tpu.matmul %66, %69, %cst_25 {dimension_numbers = #tpu.dot_dimension_numbers<[2], [2], [1], [1], [0, 0, 0, 1, 1, 1], [0], [0]>} : vector<2x8x16xbf16>, vector<2x8x16xbf16>, vector<2x8x8xf32> -> vector<2x8x8xf32>
    %cst_26 = arith.constant 2.500000e-01 : f32
    %74 = vector.broadcast %cst_26 : f32 to vector<2x8x8xf32>
    %75 = arith.mulf %73, %74 : vector<2x8x8xf32>
    %76 = vector.broadcast %0 : vector<2x1x8xf32> to vector<2x8x8xf32>
    %77 = arith.addf %75, %76 : vector<2x8x8xf32>
    %cst_27 = arith.constant dense<0xFF800000> : vector<2x8xf32>
    %78 = vector.multi_reduction <maximumf>, %77, %cst_27 [2] : vector<2x8x8xf32> to vector<2x8xf32>
    %79 = vector.shape_cast %78 : vector<2x8xf32> to vector<2x8x1xf32>
    %80 = vector.broadcast %79 : vector<2x8x1xf32> to vector<2x8x8xf32>
    %81 = arith.subf %77, %80 : vector<2x8x8xf32>
    %82 = math.exp %81 : vector<2x8x8xf32>
    %cst_28 = arith.constant dense<0.000000e+00> : vector<2x8xf32>
    %83 = vector.multi_reduction <add>, %82, %cst_28 [2] : vector<2x8x8xf32> to vector<2x8xf32>
    %84 = vector.shape_cast %83 : vector<2x8xf32> to vector<2x8x1xf32>
    %85 = tpu.reciprocal %84 {approx = true} : vector<2x8x1xf32> -> vector<2x8x1xf32>
    %86 = vector.broadcast %85 : vector<2x8x1xf32> to vector<2x8x8xf32>
    %87 = arith.mulf %82, %86 : vector<2x8x8xf32>
    %88 = arith.truncf %87 : vector<2x8x8xf32> to vector<2x8x8xbf16>
    %cst_29 = arith.constant dense<0.000000e+00> : vector<2x8x16xf32>
    %89 = tpu.matmul %88, %72, %cst_29 {dimension_numbers = #tpu.dot_dimension_numbers<[2], [1], [1], [2], [0, 0, 0, 1, 1, 2], [0], [0]>} : vector<2x8x8xbf16>, vector<2x8x16xbf16>, vector<2x8x16xf32> -> vector<2x8x16xf32>
    %90 = vector.shape_cast %89 : vector<2x8x16xf32> to vector<16x16xf32>
    %91 = arith.truncf %90 : vector<16x16xf32> to vector<16x16xbf16>
    %c0_30 = arith.constant 0 : index
    %c48 = arith.constant 48 : index
    %c0_31 = arith.constant 0 : index
    %92 = vector.load %arg3[%c0_30, %c48, %c0_31] : memref<2x224x128xbf16, #tpu.memory_space<vmem>>, vector<1x16x32xbf16>
    %93 = vector.shape_cast %92 : vector<1x16x32xbf16> to vector<16x32xbf16>
    %cst_32 = arith.constant dense<0.000000e+00> : vector<16x32xf32>
    %94 = tpu.matmul %91, %93, %cst_32 {dimension_numbers = #tpu.dot_dimension_numbers<[1], [0], [0], [1], [0, 0, 1, 1], [], []>} : vector<16x16xbf16>, vector<16x32xbf16>, vector<16x32xf32> -> vector<16x32xf32>
    %95 = arith.addf %63, %94 : vector<16x32xf32>
    %c3 = arith.constant 3 : index
    %c0_33 = arith.constant 0 : index
    %96 = vector.load %arg2[%c3, %c0_33] : memref<18x128xf32, #tpu.memory_space<vmem>>, vector<1x32xf32>
    %97 = vector.broadcast %96 : vector<1x32xf32> to vector<16x32xf32>
    %98 = arith.addf %95, %97 : vector<16x32xf32>
    %99 = arith.addf %23, %98 : vector<16x32xf32>
    %c4 = arith.constant 4 : index
    %c0_34 = arith.constant 0 : index
    %100 = vector.load %arg2[%c4, %c0_34] : memref<18x128xf32, #tpu.memory_space<vmem>>, vector<1x32xf32>
    %c5 = arith.constant 5 : index
    %c0_35 = arith.constant 0 : index
    %101 = vector.load %arg2[%c5, %c0_35] : memref<18x128xf32, #tpu.memory_space<vmem>>, vector<1x32xf32>
    %cst_36 = arith.constant dense<0.000000e+00> : vector<16xf32>
    %102 = vector.multi_reduction <add>, %99, %cst_36 [1] : vector<16x32xf32> to vector<16xf32>
    %103 = vector.shape_cast %102 : vector<16xf32> to vector<16x1xf32>
    %cst_37 = arith.constant 3.200000e+01 : f32
    %104 = vector.broadcast %cst_37 : f32 to vector<16x1xf32>
    %105 = arith.divf %103, %104 : vector<16x1xf32>
    %106 = vector.broadcast %105 : vector<16x1xf32> to vector<16x32xf32>
    %107 = arith.subf %99, %106 : vector<16x32xf32>
    %108 = arith.mulf %107, %107 : vector<16x32xf32>
    %cst_38 = arith.constant dense<0.000000e+00> : vector<16xf32>
    %109 = vector.multi_reduction <add>, %108, %cst_38 [1] : vector<16x32xf32> to vector<16xf32>
    %110 = vector.shape_cast %109 : vector<16xf32> to vector<16x1xf32>
    %cst_39 = arith.constant 3.200000e+01 : f32
    %111 = vector.broadcast %cst_39 : f32 to vector<16x1xf32>
    %112 = arith.divf %110, %111 : vector<16x1xf32>
    %cst_40 = arith.constant 9.99999996E-13 : f32
    %113 = vector.broadcast %cst_40 : f32 to vector<16x1xf32>
    %114 = arith.addf %112, %113 : vector<16x1xf32>
    %115 = math.rsqrt %114 : vector<16x1xf32>
    %116 = vector.broadcast %115 : vector<16x1xf32> to vector<16x32xf32>
    %117 = arith.mulf %107, %116 : vector<16x32xf32>
    %118 = vector.broadcast %100 : vector<1x32xf32> to vector<16x32xf32>
    %119 = arith.mulf %117, %118 : vector<16x32xf32>
    %120 = vector.broadcast %101 : vector<1x32xf32> to vector<16x32xf32>
    %121 = arith.addf %119, %120 : vector<16x32xf32>
    %122 = arith.truncf %121 : vector<16x32xf32> to vector<16x32xbf16>
    %c0_41 = arith.constant 0 : index
    %c64 = arith.constant 64 : index
    %c0_42 = arith.constant 0 : index
    %123 = vector.load %arg3[%c0_41, %c64, %c0_42] : memref<2x224x128xbf16, #tpu.memory_space<vmem>>, vector<1x32x128xbf16>
    %124 = vector.shape_cast %123 : vector<1x32x128xbf16> to vector<32x128xbf16>
    %cst_43 = arith.constant dense<0.000000e+00> : vector<16x128xf32>
    %125 = tpu.matmul %122, %124, %cst_43 {dimension_numbers = #tpu.dot_dimension_numbers<[1], [0], [0], [1], [0, 0, 1, 1], [], []>} : vector<16x32xbf16>, vector<32x128xbf16>, vector<16x128xf32> -> vector<16x128xf32>
    %c6 = arith.constant 6 : index
    %c0_44 = arith.constant 0 : index
    %126 = vector.load %arg2[%c6, %c0_44] : memref<18x128xf32, #tpu.memory_space<vmem>>, vector<1x128xf32>
    %127 = vector.broadcast %126 : vector<1x128xf32> to vector<16x128xf32>
    %128 = arith.addf %125, %127 : vector<16x128xf32>
    %cst_45 = arith.constant 5.000000e-01 : f32
    %129 = vector.broadcast %cst_45 : f32 to vector<16x128xf32>
    %130 = arith.mulf %129, %128 : vector<16x128xf32>
    %cst_46 = arith.constant 4.471500e-02 : f32
    %131 = vector.broadcast %cst_46 : f32 to vector<16x128xf32>
    %132 = arith.mulf %131, %128 : vector<16x128xf32>
    %133 = arith.mulf %132, %128 : vector<16x128xf32>
    %134 = arith.mulf %133, %128 : vector<16x128xf32>
    %135 = arith.addf %128, %134 : vector<16x128xf32>
    %cst_47 = arith.constant 0.797884583 : f32
    %136 = vector.broadcast %cst_47 : f32 to vector<16x128xf32>
    %137 = arith.mulf %136, %135 : vector<16x128xf32>
    %138 = math.tanh %137 : vector<16x128xf32>
    %cst_48 = arith.constant 1.000000e+00 : f32
    %139 = vector.broadcast %cst_48 : f32 to vector<16x128xf32>
    %140 = arith.addf %139, %138 : vector<16x128xf32>
    %141 = arith.mulf %130, %140 : vector<16x128xf32>
    %142 = arith.truncf %141 : vector<16x128xf32> to vector<16x128xbf16>
    %c0_49 = arith.constant 0 : index
    %c96 = arith.constant 96 : index
    %c0_50 = arith.constant 0 : index
    %143 = vector.load %arg3[%c0_49, %c96, %c0_50] : memref<2x224x128xbf16, #tpu.memory_space<vmem>>, vector<1x128x32xbf16>
    %144 = vector.shape_cast %143 : vector<1x128x32xbf16> to vector<128x32xbf16>
    %cst_51 = arith.constant dense<0.000000e+00> : vector<16x32xf32>
    %145 = tpu.matmul %142, %144, %cst_51 {dimension_numbers = #tpu.dot_dimension_numbers<[1], [0], [0], [1], [0, 0, 1, 1], [], []>} : vector<16x128xbf16>, vector<128x32xbf16>, vector<16x32xf32> -> vector<16x32xf32>
    %c7 = arith.constant 7 : index
    %c0_52 = arith.constant 0 : index
    %146 = vector.load %arg2[%c7, %c0_52] : memref<18x128xf32, #tpu.memory_space<vmem>>, vector<1x32xf32>
    %147 = vector.broadcast %146 : vector<1x32xf32> to vector<16x32xf32>
    %148 = arith.addf %145, %147 : vector<16x32xf32>
    %149 = arith.addf %121, %148 : vector<16x32xf32>
    %c8 = arith.constant 8 : index
    %c0_53 = arith.constant 0 : index
    %150 = vector.load %arg2[%c8, %c0_53] : memref<18x128xf32, #tpu.memory_space<vmem>>, vector<1x32xf32>
    %c9 = arith.constant 9 : index
    %c0_54 = arith.constant 0 : index
    %151 = vector.load %arg2[%c9, %c0_54] : memref<18x128xf32, #tpu.memory_space<vmem>>, vector<1x32xf32>
    %cst_55 = arith.constant dense<0.000000e+00> : vector<16xf32>
    %152 = vector.multi_reduction <add>, %149, %cst_55 [1] : vector<16x32xf32> to vector<16xf32>
    %153 = vector.shape_cast %152 : vector<16xf32> to vector<16x1xf32>
    %cst_56 = arith.constant 3.200000e+01 : f32
    %154 = vector.broadcast %cst_56 : f32 to vector<16x1xf32>
    %155 = arith.divf %153, %154 : vector<16x1xf32>
    %156 = vector.broadcast %155 : vector<16x1xf32> to vector<16x32xf32>
    %157 = arith.subf %149, %156 : vector<16x32xf32>
    %158 = arith.mulf %157, %157 : vector<16x32xf32>
    %cst_57 = arith.constant dense<0.000000e+00> : vector<16xf32>
    %159 = vector.multi_reduction <add>, %158, %cst_57 [1] : vector<16x32xf32> to vector<16xf32>
    %160 = vector.shape_cast %159 : vector<16xf32> to vector<16x1xf32>
    %cst_58 = arith.constant 3.200000e+01 : f32
    %161 = vector.broadcast %cst_58 : f32 to vector<16x1xf32>
    %162 = arith.divf %160, %161 : vector<16x1xf32>
    %cst_59 = arith.constant 9.99999996E-13 : f32
    %163 = vector.broadcast %cst_59 : f32 to vector<16x1xf32>
    %164 = arith.addf %162, %163 : vector<16x1xf32>
    %165 = math.rsqrt %164 : vector<16x1xf32>
    %166 = vector.broadcast %165 : vector<16x1xf32> to vector<16x32xf32>
    %167 = arith.mulf %157, %166 : vector<16x32xf32>
    %168 = vector.broadcast %150 : vector<1x32xf32> to vector<16x32xf32>
    %169 = arith.mulf %167, %168 : vector<16x32xf32>
    %170 = vector.broadcast %151 : vector<1x32xf32> to vector<16x32xf32>
    %171 = arith.addf %169, %170 : vector<16x32xf32>
    %172 = arith.truncf %171 : vector<16x32xf32> to vector<16x32xbf16>
    %c1_60 = arith.constant 1 : index
    %c0_61 = arith.constant 0 : index
    %c0_62 = arith.constant 0 : index
    %173 = vector.load %arg3[%c1_60, %c0_61, %c0_62] : memref<2x224x128xbf16, #tpu.memory_space<vmem>>, vector<1x32x128xbf16>
    %174 = vector.shape_cast %173 : vector<1x32x128xbf16> to vector<32x128xbf16>
    %cst_63 = arith.constant dense<0.000000e+00> : vector<16x128xf32>
    %175 = tpu.matmul %172, %174, %cst_63 {dimension_numbers = #tpu.dot_dimension_numbers<[1], [0], [0], [1], [0, 0, 1, 1], [], []>} : vector<16x32xbf16>, vector<32x128xbf16>, vector<16x128xf32> -> vector<16x128xf32>
    %c10 = arith.constant 10 : index
    %c0_64 = arith.constant 0 : index
    %176 = vector.load %arg2[%c10, %c0_64] : memref<18x128xf32, #tpu.memory_space<vmem>>, vector<1x128xf32>
    %177 = vector.broadcast %176 : vector<1x128xf32> to vector<16x128xf32>
    %178 = arith.addf %175, %177 : vector<16x128xf32>
    %cst_65 = arith.constant 0.000000e+00 : f32
    %179 = vector.broadcast %cst_65 : f32 to vector<16x32xf32>
    %180 = vector.extract_strided_slice %178 {offsets = [0, 0], sizes = [16, 16], strides = [1, 1]} : vector<16x128xf32> to vector<16x16xf32>
    %181 = vector.shape_cast %180 : vector<16x16xf32> to vector<2x8x16xf32>
    %182 = arith.truncf %181 : vector<2x8x16xf32> to vector<2x8x16xbf16>
    %183 = vector.extract_strided_slice %178 {offsets = [0, 32], sizes = [16, 16], strides = [1, 1]} : vector<16x128xf32> to vector<16x16xf32>
    %184 = vector.shape_cast %183 : vector<16x16xf32> to vector<2x8x16xf32>
    %185 = arith.truncf %184 : vector<2x8x16xf32> to vector<2x8x16xbf16>
    %186 = vector.extract_strided_slice %178 {offsets = [0, 64], sizes = [16, 16], strides = [1, 1]} : vector<16x128xf32> to vector<16x16xf32>
    %187 = vector.shape_cast %186 : vector<16x16xf32> to vector<2x8x16xf32>
    %188 = arith.truncf %187 : vector<2x8x16xf32> to vector<2x8x16xbf16>
    %cst_66 = arith.constant dense<0.000000e+00> : vector<2x8x8xf32>
    %189 = tpu.matmul %182, %185, %cst_66 {dimension_numbers = #tpu.dot_dimension_numbers<[2], [2], [1], [1], [0, 0, 0, 1, 1, 1], [0], [0]>} : vector<2x8x16xbf16>, vector<2x8x16xbf16>, vector<2x8x8xf32> -> vector<2x8x8xf32>
    %cst_67 = arith.constant 2.500000e-01 : f32
    %190 = vector.broadcast %cst_67 : f32 to vector<2x8x8xf32>
    %191 = arith.mulf %189, %190 : vector<2x8x8xf32>
    %192 = vector.broadcast %0 : vector<2x1x8xf32> to vector<2x8x8xf32>
    %193 = arith.addf %191, %192 : vector<2x8x8xf32>
    %cst_68 = arith.constant dense<0xFF800000> : vector<2x8xf32>
    %194 = vector.multi_reduction <maximumf>, %193, %cst_68 [2] : vector<2x8x8xf32> to vector<2x8xf32>
    %195 = vector.shape_cast %194 : vector<2x8xf32> to vector<2x8x1xf32>
    %196 = vector.broadcast %195 : vector<2x8x1xf32> to vector<2x8x8xf32>
    %197 = arith.subf %193, %196 : vector<2x8x8xf32>
    %198 = math.exp %197 : vector<2x8x8xf32>
    %cst_69 = arith.constant dense<0.000000e+00> : vector<2x8xf32>
    %199 = vector.multi_reduction <add>, %198, %cst_69 [2] : vector<2x8x8xf32> to vector<2x8xf32>
    %200 = vector.shape_cast %199 : vector<2x8xf32> to vector<2x8x1xf32>
    %201 = tpu.reciprocal %200 {approx = true} : vector<2x8x1xf32> -> vector<2x8x1xf32>
    %202 = vector.broadcast %201 : vector<2x8x1xf32> to vector<2x8x8xf32>
    %203 = arith.mulf %198, %202 : vector<2x8x8xf32>
    %204 = arith.truncf %203 : vector<2x8x8xf32> to vector<2x8x8xbf16>
    %cst_70 = arith.constant dense<0.000000e+00> : vector<2x8x16xf32>
    %205 = tpu.matmul %204, %188, %cst_70 {dimension_numbers = #tpu.dot_dimension_numbers<[2], [1], [1], [2], [0, 0, 0, 1, 1, 2], [0], [0]>} : vector<2x8x8xbf16>, vector<2x8x16xbf16>, vector<2x8x16xf32> -> vector<2x8x16xf32>
    %206 = vector.shape_cast %205 : vector<2x8x16xf32> to vector<16x16xf32>
    %207 = arith.truncf %206 : vector<16x16xf32> to vector<16x16xbf16>
    %c1_71 = arith.constant 1 : index
    %c32_72 = arith.constant 32 : index
    %c0_73 = arith.constant 0 : index
    %208 = vector.load %arg3[%c1_71, %c32_72, %c0_73] : memref<2x224x128xbf16, #tpu.memory_space<vmem>>, vector<1x16x32xbf16>
    %209 = vector.shape_cast %208 : vector<1x16x32xbf16> to vector<16x32xbf16>
    %cst_74 = arith.constant dense<0.000000e+00> : vector<16x32xf32>
    %210 = tpu.matmul %207, %209, %cst_74 {dimension_numbers = #tpu.dot_dimension_numbers<[1], [0], [0], [1], [0, 0, 1, 1], [], []>} : vector<16x16xbf16>, vector<16x32xbf16>, vector<16x32xf32> -> vector<16x32xf32>
    %211 = arith.addf %179, %210 : vector<16x32xf32>
    %212 = vector.extract_strided_slice %178 {offsets = [0, 16], sizes = [16, 16], strides = [1, 1]} : vector<16x128xf32> to vector<16x16xf32>
    %213 = vector.shape_cast %212 : vector<16x16xf32> to vector<2x8x16xf32>
    %214 = arith.truncf %213 : vector<2x8x16xf32> to vector<2x8x16xbf16>
    %215 = vector.extract_strided_slice %178 {offsets = [0, 48], sizes = [16, 16], strides = [1, 1]} : vector<16x128xf32> to vector<16x16xf32>
    %216 = vector.shape_cast %215 : vector<16x16xf32> to vector<2x8x16xf32>
    %217 = arith.truncf %216 : vector<2x8x16xf32> to vector<2x8x16xbf16>
    %218 = vector.extract_strided_slice %178 {offsets = [0, 80], sizes = [16, 16], strides = [1, 1]} : vector<16x128xf32> to vector<16x16xf32>
    %219 = vector.shape_cast %218 : vector<16x16xf32> to vector<2x8x16xf32>
    %220 = arith.truncf %219 : vector<2x8x16xf32> to vector<2x8x16xbf16>
    %cst_75 = arith.constant dense<0.000000e+00> : vector<2x8x8xf32>
    %221 = tpu.matmul %214, %217, %cst_75 {dimension_numbers = #tpu.dot_dimension_numbers<[2], [2], [1], [1], [0, 0, 0, 1, 1, 1], [0], [0]>} : vector<2x8x16xbf16>, vector<2x8x16xbf16>, vector<2x8x8xf32> -> vector<2x8x8xf32>
    %cst_76 = arith.constant 2.500000e-01 : f32
    %222 = vector.broadcast %cst_76 : f32 to vector<2x8x8xf32>
    %223 = arith.mulf %221, %222 : vector<2x8x8xf32>
    %224 = vector.broadcast %0 : vector<2x1x8xf32> to vector<2x8x8xf32>
    %225 = arith.addf %223, %224 : vector<2x8x8xf32>
    %cst_77 = arith.constant dense<0xFF800000> : vector<2x8xf32>
    %226 = vector.multi_reduction <maximumf>, %225, %cst_77 [2] : vector<2x8x8xf32> to vector<2x8xf32>
    %227 = vector.shape_cast %226 : vector<2x8xf32> to vector<2x8x1xf32>
    %228 = vector.broadcast %227 : vector<2x8x1xf32> to vector<2x8x8xf32>
    %229 = arith.subf %225, %228 : vector<2x8x8xf32>
    %230 = math.exp %229 : vector<2x8x8xf32>
    %cst_78 = arith.constant dense<0.000000e+00> : vector<2x8xf32>
    %231 = vector.multi_reduction <add>, %230, %cst_78 [2] : vector<2x8x8xf32> to vector<2x8xf32>
    %232 = vector.shape_cast %231 : vector<2x8xf32> to vector<2x8x1xf32>
    %233 = tpu.reciprocal %232 {approx = true} : vector<2x8x1xf32> -> vector<2x8x1xf32>
    %234 = vector.broadcast %233 : vector<2x8x1xf32> to vector<2x8x8xf32>
    %235 = arith.mulf %230, %234 : vector<2x8x8xf32>
    %236 = arith.truncf %235 : vector<2x8x8xf32> to vector<2x8x8xbf16>
    %cst_79 = arith.constant dense<0.000000e+00> : vector<2x8x16xf32>
    %237 = tpu.matmul %236, %220, %cst_79 {dimension_numbers = #tpu.dot_dimension_numbers<[2], [1], [1], [2], [0, 0, 0, 1, 1, 2], [0], [0]>} : vector<2x8x8xbf16>, vector<2x8x16xbf16>, vector<2x8x16xf32> -> vector<2x8x16xf32>
    %238 = vector.shape_cast %237 : vector<2x8x16xf32> to vector<16x16xf32>
    %239 = arith.truncf %238 : vector<16x16xf32> to vector<16x16xbf16>
    %c1_80 = arith.constant 1 : index
    %c48_81 = arith.constant 48 : index
    %c0_82 = arith.constant 0 : index
    %240 = vector.load %arg3[%c1_80, %c48_81, %c0_82] : memref<2x224x128xbf16, #tpu.memory_space<vmem>>, vector<1x16x32xbf16>
    %241 = vector.shape_cast %240 : vector<1x16x32xbf16> to vector<16x32xbf16>
    %cst_83 = arith.constant dense<0.000000e+00> : vector<16x32xf32>
    %242 = tpu.matmul %239, %241, %cst_83 {dimension_numbers = #tpu.dot_dimension_numbers<[1], [0], [0], [1], [0, 0, 1, 1], [], []>} : vector<16x16xbf16>, vector<16x32xbf16>, vector<16x32xf32> -> vector<16x32xf32>
    %243 = arith.addf %211, %242 : vector<16x32xf32>
    %c11 = arith.constant 11 : index
    %c0_84 = arith.constant 0 : index
    %244 = vector.load %arg2[%c11, %c0_84] : memref<18x128xf32, #tpu.memory_space<vmem>>, vector<1x32xf32>
    %245 = vector.broadcast %244 : vector<1x32xf32> to vector<16x32xf32>
    %246 = arith.addf %243, %245 : vector<16x32xf32>
    %247 = arith.addf %171, %246 : vector<16x32xf32>
    %c12 = arith.constant 12 : index
    %c0_85 = arith.constant 0 : index
    %248 = vector.load %arg2[%c12, %c0_85] : memref<18x128xf32, #tpu.memory_space<vmem>>, vector<1x32xf32>
    %c13 = arith.constant 13 : index
    %c0_86 = arith.constant 0 : index
    %249 = vector.load %arg2[%c13, %c0_86] : memref<18x128xf32, #tpu.memory_space<vmem>>, vector<1x32xf32>
    %cst_87 = arith.constant dense<0.000000e+00> : vector<16xf32>
    %250 = vector.multi_reduction <add>, %247, %cst_87 [1] : vector<16x32xf32> to vector<16xf32>
    %251 = vector.shape_cast %250 : vector<16xf32> to vector<16x1xf32>
    %cst_88 = arith.constant 3.200000e+01 : f32
    %252 = vector.broadcast %cst_88 : f32 to vector<16x1xf32>
    %253 = arith.divf %251, %252 : vector<16x1xf32>
    %254 = vector.broadcast %253 : vector<16x1xf32> to vector<16x32xf32>
    %255 = arith.subf %247, %254 : vector<16x32xf32>
    %256 = arith.mulf %255, %255 : vector<16x32xf32>
    %cst_89 = arith.constant dense<0.000000e+00> : vector<16xf32>
    %257 = vector.multi_reduction <add>, %256, %cst_89 [1] : vector<16x32xf32> to vector<16xf32>
    %258 = vector.shape_cast %257 : vector<16xf32> to vector<16x1xf32>
    %cst_90 = arith.constant 3.200000e+01 : f32
    %259 = vector.broadcast %cst_90 : f32 to vector<16x1xf32>
    %260 = arith.divf %258, %259 : vector<16x1xf32>
    %cst_91 = arith.constant 9.99999996E-13 : f32
    %261 = vector.broadcast %cst_91 : f32 to vector<16x1xf32>
    %262 = arith.addf %260, %261 : vector<16x1xf32>
    %263 = math.rsqrt %262 : vector<16x1xf32>
    %264 = vector.broadcast %263 : vector<16x1xf32> to vector<16x32xf32>
    %265 = arith.mulf %255, %264 : vector<16x32xf32>
    %266 = vector.broadcast %248 : vector<1x32xf32> to vector<16x32xf32>
    %267 = arith.mulf %265, %266 : vector<16x32xf32>
    %268 = vector.broadcast %249 : vector<1x32xf32> to vector<16x32xf32>
    %269 = arith.addf %267, %268 : vector<16x32xf32>
    %270 = arith.truncf %269 : vector<16x32xf32> to vector<16x32xbf16>
    %c1_92 = arith.constant 1 : index
    %c64_93 = arith.constant 64 : index
    %c0_94 = arith.constant 0 : index
    %271 = vector.load %arg3[%c1_92, %c64_93, %c0_94] : memref<2x224x128xbf16, #tpu.memory_space<vmem>>, vector<1x32x128xbf16>
    %272 = vector.shape_cast %271 : vector<1x32x128xbf16> to vector<32x128xbf16>
    %cst_95 = arith.constant dense<0.000000e+00> : vector<16x128xf32>
    %273 = tpu.matmul %270, %272, %cst_95 {dimension_numbers = #tpu.dot_dimension_numbers<[1], [0], [0], [1], [0, 0, 1, 1], [], []>} : vector<16x32xbf16>, vector<32x128xbf16>, vector<16x128xf32> -> vector<16x128xf32>
    %c14 = arith.constant 14 : index
    %c0_96 = arith.constant 0 : index
    %274 = vector.load %arg2[%c14, %c0_96] : memref<18x128xf32, #tpu.memory_space<vmem>>, vector<1x128xf32>
    %275 = vector.broadcast %274 : vector<1x128xf32> to vector<16x128xf32>
    %276 = arith.addf %273, %275 : vector<16x128xf32>
    %cst_97 = arith.constant 5.000000e-01 : f32
    %277 = vector.broadcast %cst_97 : f32 to vector<16x128xf32>
    %278 = arith.mulf %277, %276 : vector<16x128xf32>
    %cst_98 = arith.constant 4.471500e-02 : f32
    %279 = vector.broadcast %cst_98 : f32 to vector<16x128xf32>
    %280 = arith.mulf %279, %276 : vector<16x128xf32>
    %281 = arith.mulf %280, %276 : vector<16x128xf32>
    %282 = arith.mulf %281, %276 : vector<16x128xf32>
    %283 = arith.addf %276, %282 : vector<16x128xf32>
    %cst_99 = arith.constant 0.797884583 : f32
    %284 = vector.broadcast %cst_99 : f32 to vector<16x128xf32>
    %285 = arith.mulf %284, %283 : vector<16x128xf32>
    %286 = math.tanh %285 : vector<16x128xf32>
    %cst_100 = arith.constant 1.000000e+00 : f32
    %287 = vector.broadcast %cst_100 : f32 to vector<16x128xf32>
    %288 = arith.addf %287, %286 : vector<16x128xf32>
    %289 = arith.mulf %278, %288 : vector<16x128xf32>
    %290 = arith.truncf %289 : vector<16x128xf32> to vector<16x128xbf16>
    %c1_101 = arith.constant 1 : index
    %c96_102 = arith.constant 96 : index
    %c0_103 = arith.constant 0 : index
    %291 = vector.load %arg3[%c1_101, %c96_102, %c0_103] : memref<2x224x128xbf16, #tpu.memory_space<vmem>>, vector<1x128x32xbf16>
    %292 = vector.shape_cast %291 : vector<1x128x32xbf16> to vector<128x32xbf16>
    %cst_104 = arith.constant dense<0.000000e+00> : vector<16x32xf32>
    %293 = tpu.matmul %290, %292, %cst_104 {dimension_numbers = #tpu.dot_dimension_numbers<[1], [0], [0], [1], [0, 0, 1, 1], [], []>} : vector<16x128xbf16>, vector<128x32xbf16>, vector<16x32xf32> -> vector<16x32xf32>
    %c15 = arith.constant 15 : index
    %c0_105 = arith.constant 0 : index
    %294 = vector.load %arg2[%c15, %c0_105] : memref<18x128xf32, #tpu.memory_space<vmem>>, vector<1x32xf32>
    %295 = vector.broadcast %294 : vector<1x32xf32> to vector<16x32xf32>
    %296 = arith.addf %293, %295 : vector<16x32xf32>
    %297 = arith.addf %269, %296 : vector<16x32xf32>
    %c16 = arith.constant 16 : index
    %c0_106 = arith.constant 0 : index
    %298 = vector.load %arg2[%c16, %c0_106] : memref<18x128xf32, #tpu.memory_space<vmem>>, vector<1x32xf32>
    %c17 = arith.constant 17 : index
    %c0_107 = arith.constant 0 : index
    %299 = vector.load %arg2[%c17, %c0_107] : memref<18x128xf32, #tpu.memory_space<vmem>>, vector<1x32xf32>
    %cst_108 = arith.constant dense<0.000000e+00> : vector<16xf32>
    %300 = vector.multi_reduction <add>, %297, %cst_108 [1] : vector<16x32xf32> to vector<16xf32>
    %301 = vector.shape_cast %300 : vector<16xf32> to vector<16x1xf32>
    %cst_109 = arith.constant 3.200000e+01 : f32
    %302 = vector.broadcast %cst_109 : f32 to vector<16x1xf32>
    %303 = arith.divf %301, %302 : vector<16x1xf32>
    %304 = vector.broadcast %303 : vector<16x1xf32> to vector<16x32xf32>
    %305 = arith.subf %297, %304 : vector<16x32xf32>
    %306 = arith.mulf %305, %305 : vector<16x32xf32>
    %cst_110 = arith.constant dense<0.000000e+00> : vector<16xf32>
    %307 = vector.multi_reduction <add>, %306, %cst_110 [1] : vector<16x32xf32> to vector<16xf32>
    %308 = vector.shape_cast %307 : vector<16xf32> to vector<16x1xf32>
    %cst_111 = arith.constant 3.200000e+01 : f32
    %309 = vector.broadcast %cst_111 : f32 to vector<16x1xf32>
    %310 = arith.divf %308, %309 : vector<16x1xf32>
    %cst_112 = arith.constant 9.99999996E-13 : f32
    %311 = vector.broadcast %cst_112 : f32 to vector<16x1xf32>
    %312 = arith.addf %310, %311 : vector<16x1xf32>
    %313 = math.rsqrt %312 : vector<16x1xf32>
    %314 = vector.broadcast %313 : vector<16x1xf32> to vector<16x32xf32>
    %315 = arith.mulf %305, %314 : vector<16x32xf32>
    %316 = vector.broadcast %298 : vector<1x32xf32> to vector<16x32xf32>
    %317 = arith.mulf %315, %316 : vector<16x32xf32>
    %318 = vector.broadcast %299 : vector<1x32xf32> to vector<16x32xf32>
    %319 = arith.addf %317, %318 : vector<16x32xf32>
    %320 = arith.truncf %319 : vector<16x32xf32> to vector<16x32xbf16>
    %c0_113 = arith.constant 0 : index
    %c0_114 = arith.constant 0 : index
    %321 = vector.load %arg4[%c0_113, %c0_114] : memref<32x128xbf16, #tpu.memory_space<vmem>>, vector<32x128xbf16>
    %cst_115 = arith.constant dense<0.000000e+00> : vector<16x128xf32>
    %322 = tpu.matmul %320, %321, %cst_115 {dimension_numbers = #tpu.dot_dimension_numbers<[1], [0], [0], [1], [0, 0, 1, 1], [], []>} : vector<16x32xbf16>, vector<32x128xbf16>, vector<16x128xf32> -> vector<16x128xf32>
    %c0_116 = arith.constant 0 : index
    %c0_117 = arith.constant 0 : index
    %323 = vector.load %arg5[%c0_116, %c0_117] : memref<1x128xf32, #tpu.memory_space<vmem>>, vector<1x128xf32>
    %324 = vector.broadcast %323 : vector<1x128xf32> to vector<16x128xf32>
    %325 = arith.addf %322, %324 : vector<16x128xf32>
    %c0_118 = arith.constant 0 : index
    %c0_119 = arith.constant 0 : index
    %326 = vector.load %arg6[%c0_118, %c0_119] : memref<16x128xf32, #tpu.memory_space<vmem>>, vector<16x128xf32>
    tpu.vector_store %arg6[%c0_118, %c0_119], %325 {strides = array<i32>} : memref<16x128xf32, #tpu.memory_space<vmem>>, vector<16x128xf32>,
    return
  }
}

</mosaic_0001>

<bundles_post_ra>
// kernel: multitask_forward.1
= control target key start
LH: loop header
LB: loop body
LE: loop exit
PB: predicated region body
PF: predicated region fallthrough
CT: control target
= control target key end

     0   :  { %vm30_vm0 = vcmask 261120   ;;  %v2446_v15 = vmov 0.0   ;;  %vm2447_vm1 = vmmov 0   ;;  %s2448_s10 = smov 96   ;;  %vm141_vm2 = vcmask 130048   ;;  %s2449_s15 = smov 64   ;;  %s2941_s0 = inlined_call_operand.vmem [shape: f32[16,32], index: 0, kind: input, shape index: {}]   ;;  %s2942_s3 = inlined_call_operand.vmem [shape: bf16[2,224,128], index: 3, kind: input, shape index: {}]   ;;  %s2943_s2 = inlined_call_operand.vmem [shape: f32[18,128], index: 2, kind: input, shape index: {}]   ;;  %s2944_s1 = inlined_call_operand.vmem [shape: f32[2,1,8], index: 1, kind: input, shape index: {}]   ;;  %s2945_s4 = inlined_call_operand.vmem [shape: bf16[32,128], index: 4, kind: input, shape index: {}]   ;;  %s2946_s5 = inlined_call_operand.vmem [shape: f32[1,128], index: 5, kind: input, shape index: {}]   ;;  %s2947_s6 = inlined_call_operand.vmem [shape: f32[16,128], index: 6, kind: output, shape index: {}]  }
   0x1   :  { %v26_v0 = vld [vmem:[%s2941_s0] sm:$0xff]  ;;  %v27_v1 = vld [vmem:[%s2941_s0 + $0x8] sm:$0xff]  ;;  %2149 = vmatprep.subr.bf16.mxu1 %v2446_v15  ;;  %2163 = vmatprep.subr.bf16.mxu0 %v2446_v15  ;;  %vm253_vm3 = vcmask 64512   ;;  %vm283_vm4 = vcmask 1043456   ;;  %s2451_s16 = smov 112   ;;  %s2452_s17 = smov 48  }
   0x2   :  { %v31_v2 = vsel %vm30_vm0, %v26_v0, 0.0  ;;  %v34_v3 = vsel %vm30_vm0, %v27_v1, 0.0  ;;  %v2356_v14 = vld [vmem:[%s2942_s3] sm:$0xff]   ;;  %v2357_v16 = vld [vmem:[%s2942_s3 + $0x8] sm:$0xff]   ;;  %2153 = vmatprep.mubr.msk.bf16.mxu1 %vm2447_vm1, %v2446_v15  ;;  %2165 = vmatprep.mubr.msk.bf16.mxu0 %vm2447_vm1, %v2446_v15 }
   0x3   :  { %32 = vadd.xlane.f32.xlu0 %v31_v2  ;;  %2150 = vmatpush3.bf16.msra.mxu1 %v2356_v14  ;;  %v1972_v25 = vld [vmem:[%s2943_s2] ss:$0 sm:$0xff]  ;;  %v1973_v29 = vld [vmem:[%s2943_s2 + $0x1] ss:$0 sm:$0xff]  ;;  %v1974_v34 = vld [vmem:[%s2943_s2 + $0x2] ss:$0 sm:$0xff] }
   0x4   :  { %2151 = vmatprep.subr.bf16.mxu1 %v2446_v15  ;;  %v2553_v48 = vld [vmem:[%s2944_s1] ss:$0 sm:$0xff]  ;;  %v2558_v53 = vld [vmem:[%s2944_s1 + $0x1] ss:$0 sm:$0xff]  ;;  %s2450_s1 = smov 80  }
   0x7   :  { %35 = vadd.xlane.f32.xlu0 %v34_v3  ;;  %2152 = vmatpush3.bf16.msra.mxu1 %v2357_v16 }
   0x8   :  { %2157 = vmatprep.subr.bf16.mxu1 %v2446_v15 }
  0x90   :  { %v33_v4 = vpop.xlane.xlu0 %32 }
  0x91   :  { %v38_v5 = vmul.f32 0.03125, %v33_v4 }
  0x93   :  { %v40_v6 = vsub.f32 %v26_v0, %v38_v5 }
  0x94   :  { %v36_v7 = vpop.xlane.xlu0 %35 }
  0x95   :  { %v39_v8 = vmul.f32 0.03125, %v36_v7  ;;  %v42_v9 = vmul.f32 %v40_v6, %v40_v6 }
  0x97   :  { %v41_v10 = vsub.f32 %v27_v1, %v39_v8  ;;  %v44_v11 = vsel %vm30_vm0, %v42_v9, 0.0 }
  0x98   :  { %45 = vadd.xlane.f32.xlu1 %v44_v11 }
  0x99   :  { %v43_v12 = vmul.f32 %v41_v10, %v41_v10 }
  0x9b   :  { %v47_v13 = vsel %vm30_vm0, %v43_v12, 0.0 }
  0x9c   :  { %48 = vadd.xlane.f32.xlu1 %v47_v13 }
 0x125   :  { %v46_v17 = vpop.xlane.xlu1 %45 }
 0x126   :  { %v50_v18 = vmul.f32 0.03125, %v46_v17 }
 0x128   :  { %v52_v19 = vadd.f32 1e-12, %v50_v18 }
 0x129   :  { %v49_v20 = vpop.xlane.xlu1 %48 }
 0x12a   :  { %2386 = vrsqrt.f32 %v52_v19  ;;  %v51_v21 = vmul.f32 0.03125, %v49_v20 }
 0x12c   :  { %v53_v22 = vadd.f32 1e-12, %v51_v21 }
 0x12e   :  { %2388 = vrsqrt.f32 %v53_v22 }
 0x134   :  { %v2387_v23 = vpop.eup %2386 }
 0x135   :  { %v56_v24 = vmul.f32 %v2387_v23, %v40_v6 }
 0x137   :  { %v62_v28 = vmul.f32 %v1972_v25, %v56_v24 }
 0x138   :  { %v2389_v26 = vpop.eup %2388 }
 0x139   :  { %v57_v27 = vmul.f32 %v2389_v26, %v41_v10  ;;  %v2518_v31 = vadd.f32 %v1973_v29, %v62_v28 }
 0x13b   :  { %v63_v30 = vmul.f32 %v1972_v25, %v57_v27 }
 0x13d   :  { %v2520_v32 = vadd.f32 %v1973_v29, %v63_v30 }
 0x13f   :  { %v70_v33 = vpack.c.bf16 %v2520_v32, %v2518_v31 }
 0x141   :  { %2154 = vmatmul.mubr.msk.bf16.vlgmr.msra.gmra.mrb[0].mxu1 %vm30_vm0, %v70_v33 }
 0x142   :  { %2159 = vmatprep.mubr.msk.bf16.mxu1 %vm2447_vm1, %v2446_v15 }
 0x214   :  { %v129_v35 = vpop.f32.mrb[0].mxu1 }
 0x215   :  { %v130_v36 = vadd.f32 %v1974_v34, %v129_v35  ;;  %v2155_v37 = vpop.f32.mrb[1].mxu1 }
 0x216   :  { %v132_v38 = vpop.f32.mrb[2].mxu1 }
 0x217   :  { %v2530_v39 = vpack.c.bf16 %v130_v36, %v130_v36  ;;  %v133_v40 = vadd.f32 %v1974_v34, %v132_v38  ;;  %v2156_v41 = vpop.f32.mrb[3].mxu1 }
 0x219   :  { %v2532_v42 = vpack.c.bf16 %v133_v40, %v133_v40  ;;  %139 = vrot.lane.b32.xlu0 %v2530_v39, %s2448_s10 }
 0x21b   :  { %189 = vrot.lane.b32.xlu1 %v2532_v42, %s2448_s10 }
 0x28b   :  { %v140_v43 = vpop.permute.xlu0 %139 }
 0x28c   :  { %v146_v44 = vsel %vm141_vm2, %v140_v43, 0 }
 0x28d   :  { %2158 = vmatpush3.bf16.xpose.msra.mxu1 %v146_v44  ;;  %v190_v45 = vpop.permute.xlu1 %189 }
 0x28e   :  { %v195_v46 = vsel %vm141_vm2, %v190_v45, 0  ;;  %2169 = vmatprep.subr.bf16.mxu1 %v2446_v15 }
 0x28f   :  { %2164 = vmatpush3.bf16.xpose.msra.mxu0 %v195_v46 }
 0x290   :  { %2175 = vmatprep.subr.bf16.mxu0 %v2446_v15 }
 0x294   :  { %2160 = vmatmul.mubr.msk.bf16.vlgmr.msra.gmra.mrb[4].mxu1 %vm141_vm2, %v2530_v39 }
 0x295   :  { %2171 = vmatprep.mubr.msk.bf16.mxu1 %vm2447_vm1, %v2446_v15 }
 0x296   :  { %2166 = vmatmul.mubr.msk.bf16.vlgmr.msra.gmra.mrb[0].mxu0 %vm141_vm2, %v2532_v42 }
 0x297   :  { %2177 = vmatprep.mubr.msk.bf16.mxu0 %vm2447_vm1, %v2446_v15 }
 0x367   :  { %v182_v47 = vpop.f32.mrb[4].mxu1 }
 0x368   :  { %v237_v49 = vmul.f32 0.25, %v182_v47  ;;  %v2161_v50 = vpop.f32.mrb[5].mxu1 }
 0x369   :  { %v185_v51 = vpop.f32.mrb[6].mxu1  ;;  %v231_v52 = vpop.f32.mrb[0].mxu0 }
 0x36a   :  { %v238_v54 = vmul.f32 0.25, %v231_v52  ;;  %v2162_v55 = vpop.f32.mrb[7].mxu1  ;;  %v2167_v56 = vpop.f32.mrb[1].mxu0  ;;  %v251_v57 = vadd.f32 %v2553_v48, %v237_v49 }
 0x36b   :  { %v234_v58 = vpop.f32.mrb[2].mxu0 }
 0x36c   :  { %v2168_v59 = vpop.f32.mrb[3].mxu0  ;;  %v254_v60 = vsel %vm253_vm3, %v251_v57, -inf  ;;  %v252_v61 = vadd.f32 %v2558_v53, %v238_v54 }
 0x36d   :  { %255 = vmax.xlane.f32.xlu1 %v254_v60 }
 0x36e   :  { %v257_v62 = vsel %vm253_vm3, %v252_v61, -inf }
 0x36f   :  { %258 = vmax.xlane.f32.xlu0 %v257_v62 }
 0x37e   :  { %327 = vrot.lane.b32.xlu1 %v2532_v42, %s2449_s15 }
 0x382   :  { %380 = vrot.lane.b32.xlu1 %v2530_v39, %s2450_s1 }
 0x3fa   :  { %v256_v63 = vpop.xlane.xlu1 %255 }
 0x3fb   :  { %v260_v0 = vsub.f32 %v251_v57, %v256_v63 }
 0x3fc   :  { %v259_v1 = vpop.xlane.xlu0 %258 }
 0x3fd   :  { %v262_v2 = vmul.f32 1.442695, %v260_v0  ;;  %v261_v3 = vsub.f32 %v252_v61, %v259_v1 }
 0x3fe   :  { %v328_v4 = vpop.permute.xlu1 %327 }
 0x3ff   :  { %2390 = vpow2.f32 %v262_v2  ;;  %v264_v5 = vmul.f32 1.442695, %v261_v3  ;;  %v333_v6 = vsel %vm283_vm4, %v328_v4, 0 }
 0x400   :  { %2176 = vmatpush3.bf16.msra.mxu0 %v333_v6 }
 0x401   :  { %2392 = vpow2.f32 %v264_v5  ;;  %2187 = vmatprep.subr.bf16.mxu0 %v2446_v15 }
 0x402   :  { %v381_v11 = vpop.permute.xlu1 %380 }
 0x403   :  { %v386_v23 = vsel %vm141_vm2, %v381_v11, 0 }
 0x409   :  { %v2391_v7 = vpop.eup %2390 }
 0x40a   :  { %v266_v8 = vsel %vm253_vm3, %v2391_v7, 0.0 }
 0x40b   :  { %v2393_v9 = vpop.eup %2392  ;;  %267 = vadd.xlane.f32.xlu0 %v266_v8 }
 0x40c   :  { %v269_v10 = vsel %vm253_vm3, %v2393_v9, 0.0 }
 0x40d   :  { %270 = vadd.xlane.f32.xlu1 %v269_v10 }
 0x41e   :  { %430 = vrot.lane.b32.xlu1 %v2532_v42, %s2450_s1 }
 0x421   :  { %278 = vrot.lane.b32.xlu0 %v2530_v39, %s2449_s15 }
 0x422   :  { %428 = vrot.lane.b32.xlu1 %v2532_v42, %s2451_s16 }
 0x425   :  { %378 = vrot.lane.b32.xlu0 %v2530_v39, %s2451_s16 }
 0x498   :  { %v268_v12 = vpop.xlane.xlu0 %267 }
 0x499   :  { %2394 = vrcp.f32 %v268_v12 }
 0x49a   :  { %v271_v13 = vpop.xlane.xlu1 %270 }
 0x49b   :  { %2396 = vrcp.f32 %v271_v13 }
 0x49c   :  { %v279_v14 = vpop.permute.xlu0 %278 }
 0x49d   :  { %v285_v16 = vsel %vm283_vm4, %v279_v14, 0  ;;  %v2359_v14 = vld [vmem:[%s2942_s3 + $0x18] sm:$0xff]  }
 0x49e   :  { %2170 = vmatpush3.bf16.msra.mxu1 %v285_v16  ;;  %v431_v22 = vpop.permute.xlu1 %430 }
 0x49f   :  { %2181 = vmatprep.subr.bf16.mxu1 %v2446_v15  ;;  %v436_v25 = vsel %vm141_vm2, %v431_v22, 0 }
 0x4a0   :  { %v379_v26 = vpop.permute.xlu0 %378 }
 0x4a2   :  { %v429_v27 = vpop.permute.xlu1 %428 }
 0x4a3   :  { %v2395_v17 = vpop.eup %2394 }
 0x4a4   :  { %v274_v18 = vmul.f32 %v2395_v17, %v2391_v7 }
 0x4a5   :  { %v2397_v19 = vpop.eup %2396 }
 0x4a6   :  { %v275_v20 = vmul.f32 %v2397_v19, %v2393_v9  ;;  %v276_v21 = vpack.c.bf16 %v274_v18, %v274_v18 }
 0x4a8   :  { %2172 = vmatmul.mubr.msk.bf16.vlgmr.msra.gmra.mrb[8].mxu1 %vm253_vm3, %v276_v21  ;;  %v277_v24 = vpack.c.bf16 %v275_v20, %v275_v20 }
 0x4a9   :  { %2182 = vmatpush3.bf16.xpose.msra.mxu1 %v386_v23  ;;  %2183 = vmatprep.mubr.msk.bf16.mxu1 %vm2447_vm1, %v2446_v15 }
 0x4aa   :  { %2178 = vmatmul.mubr.msk.bf16.vlgmr.msra.gmra.mrb[4].mxu0 %vm253_vm3, %v277_v24  ;;  %2193 = vmatprep.subr.bf16.mxu1 %v2446_v15 }
 0x4ab   :  { %2188 = vmatpush3.bf16.xpose.msra.mxu0 %v436_v25  ;;  %2189 = vmatprep.mubr.msk.bf16.mxu0 %vm2447_vm1, %v2446_v15 }
 0x4ac   :  { %2199 = vmatprep.subr.bf16.mxu0 %v2446_v15 }
 0x4b0   :  { %2184 = vmatmul.mubr.msk.bf16.vlgmr.msra.gmra.mrb[12].mxu1 %vm141_vm2, %v379_v26 }
 0x4b1   :  { %2195 = vmatprep.mubr.msk.bf16.mxu1 %vm2447_vm1, %v2446_v15 }
 0x4b2   :  { %2190 = vmatmul.mubr.msk.bf16.vlgmr.msra.gmra.mrb[8].mxu0 %vm141_vm2, %v429_v27 }
 0x4b3   :  { %2201 = vmatprep.mubr.msk.bf16.mxu0 %vm2447_vm1, %v2446_v15 }
 0x57b   :  { %v2598_v28 = vpop.f32.mrb[8].mxu1 }
 0x57c   :  { %v2173_v29 = vpop.f32.mrb[9].mxu1 }
 0x57d   :  { %v324_v30 = vpop.f32.mrb[10].mxu1  ;;  %v2600_v33 = vpop.f32.mrb[4].mxu0 }
 0x57e   :  { %v375_v34 = vpack.c.bf16 %v2600_v33, %v2598_v28  ;;  %v2174_v35 = vpop.f32.mrb[11].mxu1  ;;  %v2179_v36 = vpop.f32.mrb[5].mxu0  ;;  %v1992_v30 = vld [vmem:[%s2943_s2 + $0x3] ss:$0 sm:$0xff] }
 0x57f   :  { %v372_v37 = vpop.f32.mrb[6].mxu0 }
 0x580   :  { %v2180_v38 = vpop.f32.mrb[7].mxu0 }
 0x583   :  { %v422_v40 = vpop.f32.mrb[12].mxu1 }
 0x584   :  { %v478_v41 = vmul.f32 0.25, %v422_v40  ;;  %v2185_v43 = vpop.f32.mrb[13].mxu1 }
 0x585   :  { %v425_v44 = vpop.f32.mrb[14].mxu1  ;;  %v472_v45 = vpop.f32.mrb[8].mxu0 }
 0x586   :  { %v479_v46 = vmul.f32 0.25, %v472_v45  ;;  %v2186_v47 = vpop.f32.mrb[15].mxu1  ;;  %v2191_v49 = vpop.f32.mrb[9].mxu0  ;;  %v480_v50 = vadd.f32 %v2553_v48, %v478_v41 }
 0x587   :  { %v475_v51 = vpop.f32.mrb[10].mxu0 }
 0x588   :  { %v2192_v52 = vpop.f32.mrb[11].mxu0  ;;  %v482_v54 = vsel %vm253_vm3, %v480_v50, -inf  ;;  %v481_v55 = vadd.f32 %v2558_v53, %v479_v46 }
 0x589   :  { %483 = vmax.xlane.f32.xlu0 %v482_v54 }
 0x58a   :  { %v485_v56 = vsel %vm253_vm3, %v481_v55, -inf }
 0x58b   :  { %486 = vmax.xlane.f32.xlu1 %v485_v56 }
 0x59c   :  { %554 = vrot.lane.b32.xlu1 %v2532_v42, %s2452_s17 }
 0x616   :  { %v484_v57 = vpop.xlane.xlu0 %483 }
 0x617   :  { %v488_v58 = vsub.f32 %v480_v50, %v484_v57  ;;  %v2361_v57 = vld [vmem:[%s2942_s3 + $0x28] sm:$0xff]  }
 0x618   :  { %v487_v59 = vpop.xlane.xlu1 %486 }
 0x619   :  { %v490_v60 = vmul.f32 1.442695, %v488_v58  ;;  %v489_v61 = vsub.f32 %v481_v55, %v487_v59 }
 0x61b   :  { %2398 = vpow2.f32 %v490_v60  ;;  %v492_v62 = vmul.f32 1.442695, %v489_v61 }
 0x61c   :  { %v555_v63 = vpop.permute.xlu1 %554 }
 0x61d   :  { %2400 = vpow2.f32 %v492_v62  ;;  %v560_v0 = vsel %vm283_vm4, %v555_v63, 0 }
 0x61e   :  { %2200 = vmatpush3.bf16.msra.mxu0 %v560_v0 }
 0x61f   :  { %2211 = vmatprep.subr.bf16.mxu0 %v2446_v15 }
 0x625   :  { %v2399_v1 = vpop.eup %2398 }
 0x626   :  { %v494_v2 = vsel %vm253_vm3, %v2399_v1, 0.0 }
 0x627   :  { %v2401_v3 = vpop.eup %2400  ;;  %495 = vadd.xlane.f32.xlu0 %v494_v2 }
 0x628   :  { %v497_v42 = vsel %vm253_vm3, %v2401_v3, 0.0 }
 0x62b   :  { %498 = vadd.xlane.f32.xlu0 %v497_v42 }
 0x641   :  { %506 = vrot.lane.b32.xlu0 %v2530_v39, %s2452_s17  ;;  %v2358_v39 = vld [vmem:[%s2942_s3 + $0x10] sm:$0xff]  }
 0x6b4   :  { %v496_v4 = vpop.xlane.xlu0 %495 }
 0x6b5   :  { %2402 = vrcp.f32 %v496_v4 }
 0x6b8   :  { %v499_v5 = vpop.xlane.xlu0 %498 }
 0x6b9   :  { %2404 = vrcp.f32 %v499_v5  ;;  %v1994_v5 = vld [vmem:[%s2943_s2 + $0x5] ss:$0 sm:$0xff] }
 0x6bc   :  { %v507_v6 = vpop.permute.xlu0 %506 }
 0x6bd   :  { %v512_v7 = vsel %vm283_vm4, %v507_v6, 0 }
 0x6be   :  { %2194 = vmatpush3.bf16.msra.mxu1 %v512_v7 }
 0x6bf   :  { %v2403_v8 = vpop.eup %2402  ;;  %2205 = vmatprep.subr.bf16.mxu1 %v2446_v15 }
 0x6c0   :  { %v502_v9 = vmul.f32 %v2403_v8, %v2399_v1  ;;  %v1993_v1 = vld [vmem:[%s2943_s2 + $0x4] ss:$0 sm:$0xff] }
 0x6c2   :  { %v504_v10 = vpack.c.bf16 %v502_v9, %v502_v9 }
 0x6c3   :  { %v2405_v11 = vpop.eup %2404 }
 0x6c4   :  { %v503_v12 = vmul.f32 %v2405_v11, %v2401_v3  ;;  %2196 = vmatmul.mubr.msk.bf16.vlgmr.msra.gmra.mrb[16].mxu1 %vm253_vm3, %v504_v10  ;;  %v2362_v10 = vld [vmem:[%s2942_s3 + $0x30] sm:$0xff]   ;;  %v2363_v11 = vld [vmem:[%s2942_s3 + $0x38] sm:$0xff]  }
 0x6c5   :  { %2207 = vmatprep.mubr.msk.bf16.mxu1 %vm2447_vm1, %v2446_v15  ;;  %2206 = vmatpush3.bf16.msra.mxu1 %v2359_v14  ;;  %v2367_v14 = vld [vmem:[%s2942_s3 + $0x58] sm:$0xff]  }
 0x6c6   :  { %v505_v13 = vpack.c.bf16 %v503_v12, %v503_v12  ;;  %2217 = vmatprep.subr.bf16.mxu1 %v2446_v15  ;;  %v2364_v12 = vld [vmem:[%s2942_s3 + $0x40] sm:$0xff]  }
 0x6c8   :  { %2202 = vmatmul.mubr.msk.bf16.vlgmr.msra.gmra.mrb[12].mxu0 %vm253_vm3, %v505_v13  ;;  %v2366_v13 = vld [vmem:[%s2942_s3 + $0x50] sm:$0xff]  }
 0x6c9   :  { %2212 = vmatpush3.bf16.msra.mxu0 %v2358_v39  ;;  %2213 = vmatprep.mubr.msk.bf16.mxu0 %vm2447_vm1, %v2446_v15  ;;  %v2365_v39 = vld [vmem:[%s2942_s3 + $0x48] sm:$0xff]  }
 0x6ca   :  { %2225 = vmatprep.subr.bf16.mxu0 %v2446_v15 }
 0x6d0   :  { %2214 = vmatmul.mubr.msk.bf16.vlgmr.msra.gmra.mrb[16].mxu0 %vm141_vm2, %v375_v34 }
 0x6d1   :  { %2241 = vmatprep.mubr.msk.bf16.mxu0 %vm2447_vm1, %v2446_v15  ;;  %2226 = vmatpush3.bf16.msra.mxu0 %v2362_v10 }
 0x6d2   :  { %2227 = vmatprep.subr.bf16.mxu0 %v2446_v15 }
 0x6d5   :  { %2228 = vmatpush3.bf16.msra.mxu0 %v2363_v11 }
 0x6d6   :  { %2229 = vmatprep.subr.bf16.mxu0 %v2446_v15 }
 0x6d9   :  { %2230 = vmatpush3.bf16.msra.mxu0 %v2364_v12 }
 0x6da   :  { %2231 = vmatprep.subr.bf16.mxu0 %v2446_v15 }
 0x6dd   :  { %2232 = vmatpush3.bf16.msra.mxu0 %v2365_v39  ;;  %v2008_v39 = vld [vmem:[%s2943_s2 + $0x8] ss:$0 sm:$0xff] }
 0x6de   :  { %2233 = vmatprep.subr.bf16.mxu0 %v2446_v15 }
 0x6e1   :  { %2234 = vmatpush3.bf16.msra.mxu0 %v2366_v13 }
 0x6e2   :  { %2235 = vmatprep.subr.bf16.mxu0 %v2446_v15 }
 0x6e5   :  { %2236 = vmatpush3.bf16.msra.mxu0 %v2367_v14 }
 0x6e6   :  { %2237 = vmatprep.subr.bf16.mxu0 %v2446_v15 }
 0x797   :  { %v548_v16 = vpop.f32.mrb[16].mxu1 }
 0x798   :  { %v2197_v17 = vpop.f32.mrb[17].mxu1 }
 0x799   :  { %v551_v18 = vpop.f32.mrb[18].mxu1  ;;  %v2369_v17 = vld [vmem:[%s2942_s3 + $0x68] sm:$0xff]  }
 0x79a   :  { %v2198_v19 = vpop.f32.mrb[19].mxu1  ;;  %v1995_v18 = vld [vmem:[%s2943_s2 + $0x6] ss:$0 sm:$0xff] }
 0x79b   :  { %v596_v20 = vpop.f32.mrb[12].mxu0 }
 0x79c   :  { %v602_v21 = vpack.c.bf16 %v596_v20, %v548_v16  ;;  %v2203_v22 = vpop.f32.mrb[13].mxu0  ;;  %v2368_v16 = vld [vmem:[%s2942_s3 + $0x60] sm:$0xff]  }
 0x79d   :  { %v599_v23 = vpop.f32.mrb[14].mxu0  ;;  %2238 = vmatpush3.bf16.msra.mxu0 %v2368_v16 }
 0x79e   :  { %v2204_v24 = vpop.f32.mrb[15].mxu0  ;;  %2208 = vmatmul.mubr.msk.bf16.vlgmr.msra.gmra.mrb[20].mxu1 %vm141_vm2, %v602_v21  ;;  %2239 = vmatprep.subr.bf16.mxu0 %v2446_v15 }
 0x79f   :  { %2221 = vmatprep.mubr.msk.bf16.mxu1 %vm2447_vm1, %v2446_v15 }
 0x7a1   :  { %2240 = vmatpush3.bf16.msra.mxu0 %v2369_v17 }
 0x7a2   :  { %2271 = vmatprep.subr.bf16.mxu0 %v2446_v15 }
 0x7a3   :  { %v698_v25 = vpop.f32.mrb[16].mxu0 }
 0x7a4   :  { %v2215_v26 = vpop.f32.mrb[17].mxu0 }
 0x7a5   :  { %v701_v27 = vpop.f32.mrb[18].mxu0 }
 0x7a6   :  { %v2216_v28 = vpop.f32.mrb[19].mxu0 }
 0x871   :  { %v648_v29 = vpop.f32.mrb[20].mxu1 }
 0x872   :  { %v699_v33 = vadd.f32 %v698_v25, %v648_v29  ;;  %v2209_v34 = vpop.f32.mrb[21].mxu1 }
 0x873   :  { %v651_v35 = vpop.f32.mrb[22].mxu1 }
 0x874   :  { %v710_v36 = vadd.f32 %v1992_v30, %v699_v33  ;;  %v702_v37 = vadd.f32 %v701_v27, %v651_v35  ;;  %v2210_v38 = vpop.f32.mrb[23].mxu1 }
 0x876   :  { %v711_v40 = vadd.f32 %v1992_v30, %v702_v37  ;;  %v712_v41 = vadd.f32 %v710_v36, %v2518_v31 }
 0x878   :  { %v716_v43 = vsel %vm30_vm0, %v712_v41, 0.0  ;;  %v713_v44 = vadd.f32 %v711_v40, %v2520_v32  ;;  %v2360_v32 = vld [vmem:[%s2942_s3 + $0x20] sm:$0xff]  }
 0x879   :  { %717 = vadd.xlane.f32.xlu1 %v716_v43  ;;  %2218 = vmatpush3.bf16.msra.mxu1 %v2360_v32 }
 0x87a   :  { %v719_v45 = vsel %vm30_vm0, %v713_v44, 0.0  ;;  %2219 = vmatprep.subr.bf16.mxu1 %v2446_v15 }
 0x87b   :  { %720 = vadd.xlane.f32.xlu0 %v719_v45 }
 0x87d   :  { %2220 = vmatpush3.bf16.msra.mxu1 %v2361_v57 }
 0x87e   :  { %2245 = vmatprep.subr.bf16.mxu1 %v2446_v15 }
 0x906   :  { %v718_v46 = vpop.xlane.xlu1 %717 }
 0x907   :  { %v722_v47 = vmul.f32 0.03125, %v718_v46 }
 0x908   :  { %v721_v49 = vpop.xlane.xlu0 %720 }
 0x909   :  { %v724_v50 = vsub.f32 %v712_v41, %v722_v47  ;;  %v723_v51 = vmul.f32 0.03125, %v721_v49  ;;  %v1999_v49 = vld [vmem:[%s2943_s2 + $0x7] ss:$0 sm:$0xff] }
 0x90b   :  { %v725_v52 = vsub.f32 %v713_v44, %v723_v51  ;;  %v726_v54 = vmul.f32 %v724_v50, %v724_v50 }
 0x90d   :  { %v728_v55 = vsel %vm30_vm0, %v726_v54, 0.0  ;;  %v727_v56 = vmul.f32 %v725_v52, %v725_v52 }
 0x90e   :  { %729 = vadd.xlane.f32.xlu0 %v728_v55 }
 0x90f   :  { %v731_v31 = vsel %vm30_vm0, %v727_v56, 0.0 }
 0x910   :  { %732 = vadd.xlane.f32.xlu1 %v731_v31 }
 0x99b   :  { %v730_v58 = vpop.xlane.xlu0 %729 }
 0x99c   :  { %v734_v59 = vmul.f32 0.03125, %v730_v58 }
 0x99d   :  { %v733_v60 = vpop.xlane.xlu1 %732 }
 0x99e   :  { %v736_v61 = vadd.f32 1e-12, %v734_v59  ;;  %v735_v62 = vmul.f32 0.03125, %v733_v60 }
 0x9a0   :  { %2406 = vrsqrt.f32 %v736_v61  ;;  %v737_v63 = vadd.f32 1e-12, %v735_v62 }
 0x9a2   :  { %2408 = vrsqrt.f32 %v737_v63 }
 0x9aa   :  { %v2407_v0 = vpop.eup %2406 }
 0x9ab   :  { %v740_v2 = vmul.f32 %v2407_v0, %v724_v50 }
 0x9ac   :  { %v2409_v3 = vpop.eup %2408 }
 0x9ad   :  { %v746_v42 = vmul.f32 %v1993_v1, %v740_v2  ;;  %v741_v4 = vmul.f32 %v2409_v3, %v725_v52 }
 0x9af   :  { %v747_v6 = vmul.f32 %v1993_v1, %v741_v4  ;;  %v2664_v7 = vadd.f32 %v1994_v5, %v746_v42  ;;  %v2370_v4 = vld [vmem:[%s2942_s3 + $0x70] sm:$0xff]  }
 0x9b1   :  { %v2666_v8 = vadd.f32 %v1994_v5, %v747_v6  ;;  %v2371_v5 = vld [vmem:[%s2942_s3 + $0x78] sm:$0xff]  }
 0x9b3   :  { %v754_v9 = vpack.c.bf16 %v2666_v8, %v2664_v7 }
 0x9b5   :  { %2222 = vmatmul.mubr.msk.bf16.vlgmr.msra.gmra.mrb[24].mxu1 %vm30_vm0, %v754_v9 }
 0x9b6   :  { %2249 = vmatprep.mubr.msk.bf16.mxu1 %vm2447_vm1, %v2446_v15  ;;  %2246 = vmatpush3.bf16.msra.mxu1 %v2370_v4 }
 0x9b7   :  { %2247 = vmatprep.subr.bf16.mxu1 %v2446_v15 }
 0x9ba   :  { %2248 = vmatpush3.bf16.msra.mxu1 %v2371_v5 }
 0x9bb   :  { %2253 = vmatprep.subr.bf16.mxu1 %v2446_v15 }
 0xa88   :  { %v813_v19 = vpop.f32.mrb[24].mxu1 }
 0xa89   :  { %v814_v20 = vadd.f32 %v1995_v18, %v813_v19  ;;  %v2223_v21 = vpop.f32.mrb[25].mxu1 }
 0xa8a   :  { %v816_v22 = vpop.f32.mrb[26].mxu1 }
 0xa8b   :  { %v822_v23 = vmul.f32 0.044715, %v814_v20  ;;  %v817_v24 = vadd.f32 %v1995_v18, %v816_v22  ;;  %v2224_v25 = vpop.f32.mrb[27].mxu1  ;;  %v820_v41 = vmul.f32 0.5, %v814_v20  ;;  %v2009_v18 = vld [vmem:[%s2943_s2 + $0x9] ss:$0 sm:$0xff] }
 0xa8d   :  { %v824_v26 = vmul.f32 %v822_v23, %v814_v20  ;;  %v823_v27 = vmul.f32 0.044715, %v817_v24  ;;  %v821_v43 = vmul.f32 0.5, %v817_v24  ;;  %v2014_v23 = vld [vmem:[%s2943_s2 + $0xa] ss:$0 sm:$0xff] }
 0xa8f   :  { %v826_v28 = vmul.f32 %v824_v26, %v814_v20  ;;  %v825_v29 = vmul.f32 %v823_v27, %v817_v24 }
 0xa91   :  { %v828_v30 = vadd.f32 %v826_v28, %v814_v20  ;;  %v827_v33 = vmul.f32 %v825_v29, %v817_v24 }
 0xa93   :  { %v830_v34 = vmul.f32 0.7978846, %v828_v30  ;;  %v829_v35 = vadd.f32 %v827_v33, %v817_v24 }
 0xa95   :  { %2410 = vtanh.f32 %v830_v34  ;;  %v831_v36 = vmul.f32 0.7978846, %v829_v35 }
 0xa97   :  { %2412 = vtanh.f32 %v831_v36 }
 0xa9f   :  { %v2411_v37 = vpop.eup %2410 }
 0xaa0   :  { %v834_v38 = vadd.f32 1.0, %v2411_v37 }
 0xaa1   :  { %v2413_v40 = vpop.eup %2412 }
 0xaa2   :  { %v835_v44 = vadd.f32 1.0, %v2413_v40  ;;  %v836_v45 = vmul.f32 %v834_v38, %v820_v41 }
 0xaa4   :  { %v837_v46 = vmul.f32 %v835_v44, %v821_v43 }
 0xaa6   :  { %v838_v47 = vpack.c.bf16 %v837_v46, %v836_v45 }
 0xaa8   :  { %2242 = vmatmul.mubr.bf16.vlgmr.msra.gmra.mrb[20].mxu0 %v838_v47 }
 0xaa9   :  { %2273 = vmatprep.mubr.msk.bf16.mxu0 %vm2447_vm1, %v2446_v15 }
 0xb7b   :  { %v942_v50 = vpop.f32.mrb[20].mxu0 }
 0xb7c   :  { %v943_v51 = vadd.f32 %v1999_v49, %v942_v50  ;;  %v2243_v52 = vpop.f32.mrb[21].mxu0 }
 0xb7d   :  { %v945_v54 = vpop.f32.mrb[22].mxu0 }
 0xb7e   :  { %v946_v55 = vadd.f32 %v1999_v49, %v945_v54  ;;  %v2244_v56 = vpop.f32.mrb[23].mxu0  ;;  %v949_v31 = vadd.f32 %v943_v51, %v2664_v7 }
 0xb80   :  { %v953_v32 = vsel %vm30_vm0, %v949_v31, 0.0  ;;  %v950_v57 = vadd.f32 %v946_v55, %v2666_v8 }
 0xb81   :  { %954 = vadd.xlane.f32.xlu0 %v953_v32 }
 0xb82   :  { %v956_v58 = vsel %vm30_vm0, %v950_v57, 0.0 }
 0xb83   :  { %957 = vadd.xlane.f32.xlu1 %v956_v58 }
 0xc0e   :  { %v955_v59 = vpop.xlane.xlu0 %954 }
 0xc0f   :  { %v959_v60 = vmul.f32 0.03125, %v955_v59 }
 0xc10   :  { %v958_v61 = vpop.xlane.xlu1 %957 }
 0xc11   :  { %v961_v62 = vsub.f32 %v949_v31, %v959_v60  ;;  %v960_v63 = vmul.f32 0.03125, %v958_v61 }
 0xc13   :  { %v962_v0 = vsub.f32 %v950_v57, %v960_v63  ;;  %v963_v1 = vmul.f32 %v961_v62, %v961_v62 }
 0xc15   :  { %v965_v2 = vsel %vm30_vm0, %v963_v1, 0.0  ;;  %v964_v3 = vmul.f32 %v962_v0, %v962_v0 }
 0xc16   :  { %966 = vadd.xlane.f32.xlu0 %v965_v2 }
 0xc17   :  { %v968_v42 = vsel %vm30_vm0, %v964_v3, 0.0 }
 0xc18   :  { %969 = vadd.xlane.f32.xlu1 %v968_v42 }
 0xca3   :  { %v967_v6 = vpop.xlane.xlu0 %966 }
 0xca4   :  { %v971_v7 = vmul.f32 0.03125, %v967_v6 }
 0xca5   :  { %v970_v8 = vpop.xlane.xlu1 %969 }
 0xca6   :  { %v973_v9 = vadd.f32 1e-12, %v971_v7  ;;  %v972_v10 = vmul.f32 0.03125, %v970_v8 }
 0xca8   :  { %2414 = vrsqrt.f32 %v973_v9  ;;  %v974_v11 = vadd.f32 1e-12, %v972_v10 }
 0xcaa   :  { %2416 = vrsqrt.f32 %v974_v11 }
 0xcb2   :  { %v2415_v12 = vpop.eup %2414 }
 0xcb3   :  { %v977_v13 = vmul.f32 %v2415_v12, %v961_v62 }
 0xcb4   :  { %v2417_v14 = vpop.eup %2416 }
 0xcb5   :  { %v983_v16 = vmul.f32 %v2008_v39, %v977_v13  ;;  %v978_v17 = vmul.f32 %v2417_v14, %v962_v0 }
 0xcb7   :  { %v984_v19 = vmul.f32 %v2008_v39, %v978_v17  ;;  %v2733_v20 = vadd.f32 %v2009_v18, %v983_v16 }
 0xcb9   :  { %v2735_v21 = vadd.f32 %v2009_v18, %v984_v19 }
 0xcbb   :  { %v991_v22 = vpack.c.bf16 %v2735_v21, %v2733_v20 }
 0xcbd   :  { %2250 = vmatmul.mubr.msk.bf16.vlgmr.msra.gmra.mrb[28].mxu1 %vm30_vm0, %v991_v22 }
 0xcbe   :  { %2255 = vmatprep.mubr.msk.bf16.mxu1 %vm2447_vm1, %v2446_v15 }
 0xd90   :  { %v1051_v24 = vpop.f32.mrb[28].mxu1 }
 0xd91   :  { %v1052_v25 = vadd.f32 %v2014_v23, %v1051_v24  ;;  %v2251_v26 = vpop.f32.mrb[29].mxu1 }
 0xd92   :  { %v1054_v27 = vpop.f32.mrb[30].mxu1 }
 0xd93   :  { %v2745_v28 = vpack.c.bf16 %v1052_v25, %v1052_v25  ;;  %v1055_v29 = vadd.f32 %v2014_v23, %v1054_v27  ;;  %v2252_v30 = vpop.f32.mrb[31].mxu1 }
 0xd95   :  { %v2747_v33 = vpack.c.bf16 %v1055_v29, %v1055_v29  ;;  %1061 = vrot.lane.b32.xlu0 %v2745_v28, %s2448_s10 }
 0xd97   :  { %1110 = vrot.lane.b32.xlu1 %v2747_v33, %s2448_s10 }
 0xe07   :  { %v1062_v34 = vpop.permute.xlu0 %1061 }
 0xe08   :  { %v1067_v35 = vsel %vm141_vm2, %v1062_v34, 0 }
 0xe09   :  { %2254 = vmatpush3.bf16.xpose.msra.mxu1 %v1067_v35  ;;  %v1111_v36 = vpop.permute.xlu1 %1110 }
 0xe0a   :  { %2259 = vmatprep.subr.bf16.mxu1 %v2446_v15  ;;  %v1116_v37 = vsel %vm141_vm2, %v1111_v36, 0 }
 0xe10   :  { %2256 = vmatmul.mubr.msk.bf16.vlgmr.msra.gmra.mrb[32].mxu1 %vm141_vm2, %v2745_v28 }
 0xe11   :  { %2260 = vmatpush3.bf16.xpose.msra.mxu1 %v1116_v37  ;;  %2261 = vmatprep.mubr.msk.bf16.mxu1 %vm2447_vm1, %v2446_v15 }
 0xe12   :  { %2265 = vmatprep.subr.bf16.mxu1 %v2446_v15 }
 0xe18   :  { %2262 = vmatmul.mubr.msk.bf16.vlgmr.msra.gmra.mrb[36].mxu1 %vm141_vm2, %v2747_v33 }
 0xe19   :  { %2267 = vmatprep.mubr.msk.bf16.mxu1 %vm2447_vm1, %v2446_v15 }
 0xee3   :  { %v1103_v38 = vpop.f32.mrb[32].mxu1 }
 0xee4   :  { %v1158_v40 = vmul.f32 0.25, %v1103_v38  ;;  %v2257_v41 = vpop.f32.mrb[33].mxu1 }
 0xee5   :  { %v1106_v43 = vpop.f32.mrb[34].mxu1 }
 0xee6   :  { %v2258_v44 = vpop.f32.mrb[35].mxu1  ;;  %v1160_v45 = vadd.f32 %v2553_v48, %v1158_v40 }
 0xee8   :  { %v1162_v46 = vsel %vm253_vm3, %v1160_v45, -inf }
 0xee9   :  { %1163 = vmax.xlane.f32.xlu1 %v1162_v46 }
 0xeeb   :  { %v1152_v47 = vpop.f32.mrb[36].mxu1 }
 0xeec   :  { %v1159_v49 = vmul.f32 0.25, %v1152_v47  ;;  %v2263_v50 = vpop.f32.mrb[37].mxu1 }
 0xeed   :  { %v1155_v51 = vpop.f32.mrb[38].mxu1 }
 0xeee   :  { %v2264_v52 = vpop.f32.mrb[39].mxu1  ;;  %v1161_v54 = vadd.f32 %v2558_v53, %v1159_v49 }
 0xef0   :  { %v1165_v55 = vsel %vm253_vm3, %v1161_v54, -inf }
 0xef1   :  { %1166 = vmax.xlane.f32.xlu0 %v1165_v55 }
 0xefa   :  { %1234 = vrot.lane.b32.xlu1 %v2747_v33, %s2449_s15 }
 0xefe   :  { %1287 = vrot.lane.b32.xlu1 %v2745_v28, %s2450_s1 }
 0xf76   :  { %v1164_v56 = vpop.xlane.xlu1 %1163 }
 0xf77   :  { %v1168_v31 = vsub.f32 %v1160_v45, %v1164_v56 }
 0xf79   :  { %v1170_v32 = vmul.f32 1.442695, %v1168_v31 }
 0xf7a   :  { %v1235_v57 = vpop.permute.xlu1 %1234 }
 0xf7b   :  { %2418 = vpow2.f32 %v1170_v32  ;;  %v1240_v58 = vsel %vm283_vm4, %v1235_v57, 0 }
 0xf7c   :  { %2272 = vmatpush3.bf16.msra.mxu0 %v1240_v58 }
 0xf7d   :  { %2283 = vmatprep.subr.bf16.mxu0 %v2446_v15 }
 0xf7e   :  { %v1167_v59 = vpop.xlane.xlu0 %1166  ;;  %v1288_v3 = vpop.permute.xlu1 %1287 }
 0xf7f   :  { %v1169_v60 = vsub.f32 %v1161_v54, %v1167_v59  ;;  %v1293_v9 = vsel %vm141_vm2, %v1288_v3, 0  ;;  %v2373_v3 = vld [vmem:[%s2942_s3 + $0x88] sm:$0xff]  }
 0xf81   :  { %v1172_v61 = vmul.f32 1.442695, %v1169_v60 }
 0xf83   :  { %2420 = vpow2.f32 %v1172_v61 }
 0xf85   :  { %v2419_v62 = vpop.eup %2418 }
 0xf86   :  { %v1174_v63 = vsel %vm253_vm3, %v2419_v62, 0.0 }
 0xf87   :  { %1175 = vadd.xlane.f32.xlu0 %v1174_v63 }
 0xf8d   :  { %v2421_v0 = vpop.eup %2420 }
 0xf8e   :  { %v1177_v1 = vsel %vm253_vm3, %v2421_v0, 0.0 }
 0xf8f   :  { %1178 = vadd.xlane.f32.xlu1 %v1177_v1  ;;  %v2372_v1 = vld [vmem:[%s2942_s3 + $0x80] sm:$0xff]  }
 0xf9d   :  { %1186 = vrot.lane.b32.xlu0 %v2745_v28, %s2449_s15 }
 0xfa0   :  { %1337 = vrot.lane.b32.xlu1 %v2747_v33, %s2450_s1 }
 0xfa1   :  { %1285 = vrot.lane.b32.xlu0 %v2745_v28, %s2451_s16 }
 0xfa4   :  { %1335 = vrot.lane.b32.xlu1 %v2747_v33, %s2451_s16 }
0x1014   :  { %v1176_v2 = vpop.xlane.xlu0 %1175 }
0x1015   :  { %2422 = vrcp.f32 %v1176_v2 }
0x1018   :  { %v1187_v42 = vpop.permute.xlu0 %1186 }
0x1019   :  { %v1192_v4 = vsel %vm283_vm4, %v1187_v42, 0 }
0x101a   :  { %2266 = vmatpush3.bf16.msra.mxu1 %v1192_v4 }
0x101b   :  { %2277 = vmatprep.subr.bf16.mxu1 %v2446_v15 }
0x101c   :  { %v1179_v5 = vpop.xlane.xlu1 %1178  ;;  %v1286_v13 = vpop.permute.xlu0 %1285 }
0x101d   :  { %2424 = vrcp.f32 %v1179_v5 }
0x101f   :  { %v2423_v6 = vpop.eup %2422 }
0x1020   :  { %v1182_v7 = vmul.f32 %v2423_v6, %v2419_v62  ;;  %v1338_v12 = vpop.permute.xlu1 %1337 }
0x1021   :  { %v1343_v14 = vsel %vm141_vm2, %v1338_v12, 0 }
0x1022   :  { %v1184_v8 = vpack.c.bf16 %v1182_v7, %v1182_v7 }
0x1024   :  { %2268 = vmatmul.mubr.msk.bf16.vlgmr.msra.gmra.mrb[40].mxu1 %vm253_vm3, %v1184_v8  ;;  %v1336_v16 = vpop.permute.xlu1 %1335 }
0x1025   :  { %2278 = vmatpush3.bf16.xpose.msra.mxu1 %v1293_v9  ;;  %2279 = vmatprep.mubr.msk.bf16.mxu1 %vm2447_vm1, %v2446_v15 }
0x1026   :  { %2289 = vmatprep.subr.bf16.mxu1 %v2446_v15 }
0x1027   :  { %v2425_v10 = vpop.eup %2424 }
0x1028   :  { %v1183_v11 = vmul.f32 %v2425_v10, %v2421_v0 }
0x102a   :  { %v1185_v39 = vpack.c.bf16 %v1183_v11, %v1183_v11 }
0x102c   :  { %2274 = vmatmul.mubr.msk.bf16.vlgmr.msra.gmra.mrb[24].mxu0 %vm253_vm3, %v1185_v39  ;;  %2280 = vmatmul.mubr.msk.bf16.vlgmr.msra.gmra.mrb[44].mxu1 %vm141_vm2, %v1286_v13 }
0x102d   :  { %2284 = vmatpush3.bf16.xpose.msra.mxu0 %v1343_v14  ;;  %2285 = vmatprep.mubr.msk.bf16.mxu0 %vm2447_vm1, %v2446_v15 }
0x102e   :  { %2295 = vmatprep.subr.bf16.mxu0 %v2446_v15  ;;  %2291 = vmatprep.mubr.msk.bf16.mxu1 %vm2447_vm1, %v2446_v15 }
0x1034   :  { %2286 = vmatmul.mubr.msk.bf16.vlgmr.msra.gmra.mrb[28].mxu0 %vm141_vm2, %v1336_v16 }
0x1035   :  { %2297 = vmatprep.mubr.msk.bf16.mxu0 %vm2447_vm1, %v2446_v15 }
0x10f7   :  { %v2803_v17 = vpop.f32.mrb[40].mxu1 }
0x10f8   :  { %v2269_v18 = vpop.f32.mrb[41].mxu1 }
0x10f9   :  { %v1231_v19 = vpop.f32.mrb[42].mxu1 }
0x10fa   :  { %v2270_v22 = vpop.f32.mrb[43].mxu1 }
0x10ff   :  { %v2805_v23 = vpop.f32.mrb[24].mxu0  ;;  %v1329_v24 = vpop.f32.mrb[44].mxu1 }
0x1100   :  { %v1282_v25 = vpack.c.bf16 %v2805_v23, %v2803_v17  ;;  %v1385_v26 = vmul.f32 0.25, %v1329_v24  ;;  %v2275_v27 = vpop.f32.mrb[25].mxu0  ;;  %v2281_v29 = vpop.f32.mrb[45].mxu1  ;;  %v2034_v17 = vld [vmem:[%s2943_s2 + $0xb] ss:$0 sm:$0xff] }
0x1101   :  { %v1279_v30 = vpop.f32.mrb[26].mxu0  ;;  %v1332_v34 = vpop.f32.mrb[46].mxu1 }
0x1102   :  { %v2276_v35 = vpop.f32.mrb[27].mxu0  ;;  %v2282_v36 = vpop.f32.mrb[47].mxu1  ;;  %v1387_v37 = vadd.f32 %v2553_v48, %v1385_v26 }
0x1104   :  { %v1389_v38 = vsel %vm253_vm3, %v1387_v37, -inf }
0x1105   :  { %1390 = vmax.xlane.f32.xlu0 %v1389_v38 }
0x1107   :  { %v1379_v40 = vpop.f32.mrb[28].mxu0 }
0x1108   :  { %v1386_v41 = vmul.f32 0.25, %v1379_v40  ;;  %v2287_v43 = vpop.f32.mrb[29].mxu0 }
0x1109   :  { %v1382_v44 = vpop.f32.mrb[30].mxu0 }
0x110a   :  { %v2288_v45 = vpop.f32.mrb[31].mxu0  ;;  %v1388_v46 = vadd.f32 %v2558_v53, %v1386_v41 }
0x110c   :  { %v1392_v47 = vsel %vm253_vm3, %v1388_v46, -inf }
0x110d   :  { %1393 = vmax.xlane.f32.xlu1 %v1392_v47 }
0x111e   :  { %1461 = vrot.lane.b32.xlu1 %v2747_v33, %s2452_s17 }
0x1192   :  { %v1391_v49 = vpop.xlane.xlu0 %1390 }
0x1193   :  { %v1395_v50 = vsub.f32 %v1387_v37, %v1391_v49 }
0x1195   :  { %v1397_v51 = vmul.f32 1.442695, %v1395_v50 }
0x1197   :  { %2426 = vpow2.f32 %v1397_v51 }
0x119a   :  { %v1394_v48 = vpop.xlane.xlu1 %1393 }
0x119b   :  { %v1396_v52 = vsub.f32 %v1388_v46, %v1394_v48  ;;  %v2375_v46 = vld [vmem:[%s2942_s3 + $0x98] sm:$0xff]  }
0x119d   :  { %v1399_v54 = vmul.f32 1.442695, %v1396_v52 }
0x119e   :  { %v1462_v55 = vpop.permute.xlu1 %1461 }
0x119f   :  { %2428 = vpow2.f32 %v1399_v54  ;;  %v1467_v56 = vsel %vm283_vm4, %v1462_v55, 0  ;;  %v2035_v55 = vld [vmem:[%s2943_s2 + $0xc] ss:$0 sm:$0xff] }
0x11a0   :  { %2296 = vmatpush3.bf16.msra.mxu0 %v1467_v56 }
0x11a1   :  { %v2427_v31 = vpop.eup %2426  ;;  %2307 = vmatprep.subr.bf16.mxu0 %v2446_v15 }
0x11a2   :  { %v1401_v53 = vsel %vm253_vm3, %v2427_v31, 0.0 }
0x11a3   :  { %1402 = vadd.xlane.f32.xlu0 %v1401_v53 }
0x11a9   :  { %v2429_v32 = vpop.eup %2428 }
0x11aa   :  { %v1404_v33 = vsel %vm253_vm3, %v2429_v32, 0.0 }
0x11ab   :  { %1405 = vadd.xlane.f32.xlu0 %v1404_v33  ;;  %v2036_v33 = vld [vmem:[%s2943_s2 + $0xd] ss:$0 sm:$0xff] }
0x11c1   :  { %1413 = vrot.lane.b32.xlu0 %v2745_v28, %s2452_s17 }
0x1230   :  { %v1403_v57 = vpop.xlane.xlu0 %1402 }
0x1231   :  { %2430 = vrcp.f32 %v1403_v57 }
0x1238   :  { %v1406_v58 = vpop.xlane.xlu0 %1405 }
0x1239   :  { %2432 = vrcp.f32 %v1406_v58 }
0x123b   :  { %v2431_v59 = vpop.eup %2430 }
0x123c   :  { %v1409_v60 = vmul.f32 %v2431_v59, %v2427_v31  ;;  %v1414_v61 = vpop.permute.xlu0 %1413 }
0x123d   :  { %v1419_v62 = vsel %vm283_vm4, %v1414_v61, 0  ;;  %v2376_v61 = vld [vmem:[%s2942_s3 + $0xa0] sm:$0xff]  }
0x123e   :  { %2290 = vmatpush3.bf16.msra.mxu1 %v1419_v62  ;;  %v1411_v63 = vpack.c.bf16 %v1409_v60, %v1409_v60  ;;  %v2377_v62 = vld [vmem:[%s2942_s3 + $0xa8] sm:$0xff]  }
0x123f   :  { %2301 = vmatprep.subr.bf16.mxu1 %v2446_v15 }
0x1241   :  { %2292 = vmatmul.mubr.msk.bf16.vlgmr.msra.gmra.mrb[48].mxu1 %vm253_vm3, %v1411_v63  ;;  %v2378_v63 = vld [vmem:[%s2942_s3 + $0xb0] sm:$0xff]  }
0x1242   :  { %2303 = vmatprep.mubr.msk.bf16.mxu1 %vm2447_vm1, %v2446_v15  ;;  %2302 = vmatpush3.bf16.msra.mxu1 %v2373_v3  ;;  %v2383_v3 = vld [vmem:[%s2942_s3 + $0xd8] sm:$0xff]  }
0x1243   :  { %v2433_v0 = vpop.eup %2432  ;;  %2313 = vmatprep.subr.bf16.mxu1 %v2446_v15 }
0x1244   :  { %v1410_v28 = vmul.f32 %v2433_v0, %v2429_v32  ;;  %v2379_v0 = vld [vmem:[%s2942_s3 + $0xb8] sm:$0xff]  }
0x1246   :  { %v1412_v2 = vpack.c.bf16 %v1410_v28, %v1410_v28  ;;  %v2380_v28 = vld [vmem:[%s2942_s3 + $0xc0] sm:$0xff]  }
0x1248   :  { %2298 = vmatmul.mubr.msk.bf16.vlgmr.msra.gmra.mrb[32].mxu0 %vm253_vm3, %v1412_v2  ;;  %v2382_v2 = vld [vmem:[%s2942_s3 + $0xd0] sm:$0xff]  }
0x1249   :  { %2308 = vmatpush3.bf16.msra.mxu0 %v2372_v1  ;;  %2309 = vmatprep.mubr.msk.bf16.mxu0 %vm2447_vm1, %v2446_v15  ;;  %v2381_v1 = vld [vmem:[%s2942_s3 + $0xc8] sm:$0xff]  }
0x124a   :  { %2321 = vmatprep.subr.bf16.mxu0 %v2446_v15 }
0x1250   :  { %2310 = vmatmul.mubr.msk.bf16.vlgmr.msra.gmra.mrb[36].mxu0 %vm141_vm2, %v1282_v25 }
0x1251   :  { %2337 = vmatprep.mubr.msk.bf16.mxu0 %vm2447_vm1, %v2446_v15  ;;  %2322 = vmatpush3.bf16.msra.mxu0 %v2376_v61 }
0x1252   :  { %2323 = vmatprep.subr.bf16.mxu0 %v2446_v15 }
0x1255   :  { %2324 = vmatpush3.bf16.msra.mxu0 %v2377_v62  ;;  %v2070_v62 = vld [vmem:[%s2943_s2 + $0x10] ss:$0 sm:$0xff] }
0x1256   :  { %2325 = vmatprep.subr.bf16.mxu0 %v2446_v15 }
0x1259   :  { %2326 = vmatpush3.bf16.msra.mxu0 %v2378_v63 }
0x125a   :  { %2327 = vmatprep.subr.bf16.mxu0 %v2446_v15 }
0x125d   :  { %2328 = vmatpush3.bf16.msra.mxu0 %v2379_v0 }
0x125e   :  { %2329 = vmatprep.subr.bf16.mxu0 %v2446_v15 }
0x1261   :  { %2330 = vmatpush3.bf16.msra.mxu0 %v2380_v28 }
0x1262   :  { %2331 = vmatprep.subr.bf16.mxu0 %v2446_v15 }
0x1265   :  { %2332 = vmatpush3.bf16.msra.mxu0 %v2381_v1 }
0x1266   :  { %2333 = vmatprep.subr.bf16.mxu0 %v2446_v15 }
0x1269   :  { %2334 = vmatpush3.bf16.msra.mxu0 %v2382_v2 }
0x126a   :  { %2335 = vmatprep.subr.bf16.mxu0 %v2446_v15 }
0x126d   :  { %2336 = vmatpush3.bf16.msra.mxu0 %v2383_v3 }
0x1314   :  { %v1455_v42 = vpop.f32.mrb[48].mxu1 }
0x1315   :  { %v2293_v4 = vpop.f32.mrb[49].mxu1 }
0x1316   :  { %v1458_v5 = vpop.f32.mrb[50].mxu1 }
0x1317   :  { %v2294_v6 = vpop.f32.mrb[51].mxu1 }
0x131b   :  { %v1503_v7 = vpop.f32.mrb[32].mxu0 }
0x131c   :  { %v1509_v8 = vpack.c.bf16 %v1503_v7, %v1455_v42  ;;  %v2299_v9 = vpop.f32.mrb[33].mxu0  ;;  %v2041_v42 = vld [vmem:[%s2943_s2 + $0xe] ss:$0 sm:$0xff] }
0x131d   :  { %v1506_v10 = vpop.f32.mrb[34].mxu0 }
0x131e   :  { %v2300_v11 = vpop.f32.mrb[35].mxu0  ;;  %2304 = vmatmul.mubr.msk.bf16.vlgmr.msra.gmra.mrb[52].mxu1 %vm141_vm2, %v1509_v8 }
0x131f   :  { %2317 = vmatprep.mubr.msk.bf16.mxu1 %vm2447_vm1, %v2446_v15 }
0x1323   :  { %v1605_v12 = vpop.f32.mrb[36].mxu0 }
0x1324   :  { %v2311_v39 = vpop.f32.mrb[37].mxu0 }
0x1325   :  { %v1608_v13 = vpop.f32.mrb[38].mxu0 }
0x1326   :  { %v2312_v14 = vpop.f32.mrb[39].mxu0 }
0x13f1   :  { %v1555_v16 = vpop.f32.mrb[52].mxu1 }
0x13f2   :  { %v1606_v18 = vadd.f32 %v1605_v12, %v1555_v16  ;;  %v2305_v19 = vpop.f32.mrb[53].mxu1 }
0x13f3   :  { %v1558_v22 = vpop.f32.mrb[54].mxu1 }
0x13f4   :  { %v1617_v23 = vadd.f32 %v2034_v17, %v1606_v18  ;;  %v1609_v24 = vadd.f32 %v1608_v13, %v1558_v22  ;;  %v2306_v25 = vpop.f32.mrb[55].mxu1 }
0x13f6   :  { %v1618_v26 = vadd.f32 %v2034_v17, %v1609_v24  ;;  %v1619_v27 = vadd.f32 %v1617_v23, %v2733_v20 }
0x13f8   :  { %v1623_v29 = vsel %vm30_vm0, %v1619_v27, 0.0  ;;  %v1620_v30 = vadd.f32 %v1618_v26, %v2735_v21  ;;  %v2374_v21 = vld [vmem:[%s2942_s3 + $0x90] sm:$0xff]  }
0x13f9   :  { %1624 = vadd.xlane.f32.xlu1 %v1623_v29  ;;  %2314 = vmatpush3.bf16.msra.mxu1 %v2374_v21 }
0x13fa   :  { %v1626_v34 = vsel %vm30_vm0, %v1620_v30, 0.0  ;;  %2315 = vmatprep.subr.bf16.mxu1 %v2446_v15 }
0x13fb   :  { %1627 = vadd.xlane.f32.xlu0 %v1626_v34 }
0x13fd   :  { %2316 = vmatpush3.bf16.msra.mxu1 %v2375_v46 }
0x13fe   :  { %2341 = vmatprep.subr.bf16.mxu1 %v2446_v15 }
0x1486   :  { %v1625_v35 = vpop.xlane.xlu1 %1624 }
0x1487   :  { %v1629_v36 = vmul.f32 0.03125, %v1625_v35  ;;  %v2061_v35 = vld [vmem:[%s2943_s2 + $0xf] ss:$0 sm:$0xff] }
0x1488   :  { %v1628_v37 = vpop.xlane.xlu0 %1627 }
0x1489   :  { %v1631_v38 = vsub.f32 %v1619_v27, %v1629_v36  ;;  %v1630_v40 = vmul.f32 0.03125, %v1628_v37 }
0x148b   :  { %v1632_v41 = vsub.f32 %v1620_v30, %v1630_v40  ;;  %v1633_v43 = vmul.f32 %v1631_v38, %v1631_v38 }
0x148d   :  { %v1635_v44 = vsel %vm30_vm0, %v1633_v43, 0.0  ;;  %v1634_v45 = vmul.f32 %v1632_v41, %v1632_v41 }
0x148e   :  { %1636 = vadd.xlane.f32.xlu0 %v1635_v44 }
0x148f   :  { %v1638_v20 = vsel %vm30_vm0, %v1634_v45, 0.0 }
0x1490   :  { %1639 = vadd.xlane.f32.xlu1 %v1638_v20 }
0x151b   :  { %v1637_v47 = vpop.xlane.xlu0 %1636 }
0x151c   :  { %v1641_v49 = vmul.f32 0.03125, %v1637_v47 }
0x151d   :  { %v1640_v50 = vpop.xlane.xlu1 %1639 }
0x151e   :  { %v1643_v51 = vadd.f32 1e-12, %v1641_v49  ;;  %v1642_v48 = vmul.f32 0.03125, %v1640_v50 }
0x1520   :  { %2434 = vrsqrt.f32 %v1643_v51  ;;  %v1644_v52 = vadd.f32 1e-12, %v1642_v48 }
0x1522   :  { %2436 = vrsqrt.f32 %v1644_v52 }
0x152a   :  { %v2435_v54 = vpop.eup %2434 }
0x152b   :  { %v1647_v56 = vmul.f32 %v2435_v54, %v1631_v38 }
0x152c   :  { %v2437_v31 = vpop.eup %2436 }
0x152d   :  { %v1653_v53 = vmul.f32 %v2035_v55, %v1647_v56  ;;  %v1648_v32 = vmul.f32 %v2437_v31, %v1632_v41  ;;  %v2384_v31 = vld [vmem:[%s2945_s4] sm:$0xff]  }
0x152f   :  { %v1654_v57 = vmul.f32 %v2035_v55, %v1648_v32  ;;  %v2866_v58 = vadd.f32 %v2036_v33, %v1653_v53  ;;  %v2385_v53 = vld [vmem:[%s2945_s4 + $0x8] sm:$0xff]  }
0x1531   :  { %v2868_v59 = vadd.f32 %v2036_v33, %v1654_v57 }
0x1533   :  { %v1661_v60 = vpack.c.bf16 %v2868_v59, %v2866_v58 }
0x1535   :  { %2318 = vmatmul.mubr.msk.bf16.vlgmr.msra.gmra.mrb[56].mxu1 %vm30_vm0, %v1661_v60 }
0x1536   :  { %2345 = vmatprep.mubr.msk.bf16.mxu1 %vm2447_vm1, %v2446_v15  ;;  %2342 = vmatpush3.bf16.msra.mxu1 %v2384_v31 }
0x1537   :  { %2343 = vmatprep.subr.bf16.mxu1 %v2446_v15  ;;  %v2071_v15 = vld [vmem:[%s2943_s2 + $0x11] ss:$0 sm:$0xff] }
0x153a   :  { %2344 = vmatpush3.bf16.msra.mxu1 %v2385_v53 }
0x1608   :  { %v1720_v4 = vpop.f32.mrb[56].mxu1 }
0x1609   :  { %v1721_v5 = vadd.f32 %v2041_v42, %v1720_v4  ;;  %v2319_v6 = vpop.f32.mrb[57].mxu1 }
0x160a   :  { %v1723_v7 = vpop.f32.mrb[58].mxu1 }
0x160b   :  { %v1729_v8 = vmul.f32 0.044715, %v1721_v5  ;;  %v1724_v9 = vadd.f32 %v2041_v42, %v1723_v7  ;;  %v2320_v10 = vpop.f32.mrb[59].mxu1  ;;  %v1727_v25 = vmul.f32 0.5, %v1721_v5 }
0x160d   :  { %v1731_v11 = vmul.f32 %v1729_v8, %v1721_v5  ;;  %v1730_v12 = vmul.f32 0.044715, %v1724_v9  ;;  %v1728_v26 = vmul.f32 0.5, %v1724_v9 }
0x160f   :  { %v1733_v39 = vmul.f32 %v1731_v11, %v1721_v5  ;;  %v1732_v13 = vmul.f32 %v1730_v12, %v1724_v9 }
0x1611   :  { %v1735_v14 = vadd.f32 %v1733_v39, %v1721_v5  ;;  %v1734_v16 = vmul.f32 %v1732_v13, %v1724_v9  ;;  %v2072_v5 = vld [vmem:[%s2946_s5] ss:$0 sm:$0xff] }
0x1613   :  { %v1737_v17 = vmul.f32 0.7978846, %v1735_v14  ;;  %v1736_v18 = vadd.f32 %v1734_v16, %v1724_v9 }
0x1615   :  { %2438 = vtanh.f32 %v1737_v17  ;;  %v1738_v19 = vmul.f32 0.7978846, %v1736_v18 }
0x1617   :  { %2440 = vtanh.f32 %v1738_v19 }
0x161f   :  { %v2439_v22 = vpop.eup %2438 }
0x1620   :  { %v1741_v23 = vadd.f32 1.0, %v2439_v22 }
0x1621   :  { %v2441_v24 = vpop.eup %2440 }
0x1622   :  { %v1742_v27 = vadd.f32 1.0, %v2441_v24  ;;  %v1743_v29 = vmul.f32 %v1741_v23, %v1727_v25 }
0x1624   :  { %v1744_v30 = vmul.f32 %v1742_v27, %v1728_v26 }
0x1626   :  { %v1745_v34 = vpack.c.bf16 %v1744_v30, %v1743_v29 }
0x1628   :  { %2338 = vmatmul.mubr.bf16.vlgmr.msra.gmra.mrb[40].mxu0 %v1745_v34 }
0x16fb   :  { %v1849_v36 = vpop.f32.mrb[40].mxu0 }
0x16fc   :  { %v1850_v37 = vadd.f32 %v2061_v35, %v1849_v36  ;;  %v2339_v38 = vpop.f32.mrb[41].mxu0 }
0x16fd   :  { %v1852_v40 = vpop.f32.mrb[42].mxu0 }
0x16fe   :  { %v1853_v41 = vadd.f32 %v2061_v35, %v1852_v40  ;;  %v2340_v43 = vpop.f32.mrb[43].mxu0  ;;  %v1856_v44 = vadd.f32 %v1850_v37, %v2866_v58 }
0x1700   :  { %v1860_v45 = vsel %vm30_vm0, %v1856_v44, 0.0  ;;  %v1857_v20 = vadd.f32 %v1853_v41, %v2868_v59 }
0x1701   :  { %1861 = vadd.xlane.f32.xlu0 %v1860_v45 }
0x1702   :  { %v1863_v21 = vsel %vm30_vm0, %v1857_v20, 0.0 }
0x1703   :  { %1864 = vadd.xlane.f32.xlu1 %v1863_v21 }
0x178e   :  { %v1862_v46 = vpop.xlane.xlu0 %1861 }
0x178f   :  { %v1866_v47 = vmul.f32 0.03125, %v1862_v46 }
0x1790   :  { %v1865_v49 = vpop.xlane.xlu1 %1864 }
0x1791   :  { %v1868_v50 = vsub.f32 %v1856_v44, %v1866_v47  ;;  %v1867_v51 = vmul.f32 0.03125, %v1865_v49 }
0x1793   :  { %v1869_v48 = vsub.f32 %v1857_v20, %v1867_v51  ;;  %v1870_v52 = vmul.f32 %v1868_v50, %v1868_v50 }
0x1795   :  { %v1872_v54 = vsel %vm30_vm0, %v1870_v52, 0.0  ;;  %v1871_v55 = vmul.f32 %v1869_v48, %v1869_v48 }
0x1796   :  { %1873 = vadd.xlane.f32.xlu0 %v1872_v54 }
0x1797   :  { %v1875_v56 = vsel %vm30_vm0, %v1871_v55, 0.0 }
0x1798   :  { %1876 = vadd.xlane.f32.xlu1 %v1875_v56 }
0x1823   :  { %v1874_v32 = vpop.xlane.xlu0 %1873 }
0x1824   :  { %v1878_v33 = vmul.f32 0.03125, %v1874_v32 }
0x1825   :  { %v1877_v57 = vpop.xlane.xlu1 %1876 }
0x1826   :  { %v1880_v58 = vadd.f32 1e-12, %v1878_v33  ;;  %v1879_v59 = vmul.f32 0.03125, %v1877_v57 }
0x1828   :  { %2442 = vrsqrt.f32 %v1880_v58  ;;  %v1881_v60 = vadd.f32 1e-12, %v1879_v59 }
0x182a   :  { %2444 = vrsqrt.f32 %v1881_v60 }
0x1832   :  { %v2443_v61 = vpop.eup %2442 }
0x1833   :  { %v1884_v63 = vmul.f32 %v2443_v61, %v1868_v50 }
0x1834   :  { %v2445_v0 = vpop.eup %2444 }
0x1835   :  { %v1890_v28 = vmul.f32 %v2070_v62, %v1884_v63  ;;  %v1885_v1 = vmul.f32 %v2445_v0, %v1869_v48 }
0x1837   :  { %v1891_v2 = vmul.f32 %v2070_v62, %v1885_v1  ;;  %v1896_v3 = vadd.f32 %v2071_v15, %v1890_v28 }
0x1839   :  { %v1897_v42 = vadd.f32 %v2071_v15, %v1891_v2 }
0x183b   :  { %v1898_v4 = vpack.c.bf16 %v1897_v42, %v1896_v3 }
0x183d   :  { %2346 = vmatmul.mubr.msk.bf16.vlgmr.msra.gmra.mrb[60].mxu1 %vm30_vm0, %v1898_v4 }
0x1910   :  { %v1959_v6 = vpop.f32.mrb[60].mxu1 }
0x1911   :  { %v1960_v7 = vadd.f32 %v2072_v5, %v1959_v6  ;;  %v2347_v8 = vpop.f32.mrb[61].mxu1 }
0x1912   :  { %v1962_v9 = vpop.f32.mrb[62].mxu1 }
0x1913   :  { %1966 = vst [vmem:[%s2947_s6] sm:$0xff] %v1960_v7  ;;  %v1963_v10 = vadd.f32 %v2072_v5, %v1962_v9  ;;  %v2348_v11 = vpop.f32.mrb[63].mxu1 }
0x1915   :  { %1967 = vst [vmem:[%s2947_s6 + $0x8] sm:$0xff] %v1963_v10 }

</bundles_post_ra>
